<compile_context>
chip_gen: v7x
topology: tpu7x:2x2x1
jax: 0.10.0
libtpu: 0.0.40
codegen_flags: <defaults>
</compile_context>

<pallas_src>
import functools

import jax
import jax.numpy as jnp
from jax.experimental import pallas as pl
from jax.experimental.pallas import tpu as pltpu

_H1, _H2 = 2000, 500  # hidden widths fixed by the module


def _round_up(x: int, m: int) -> int:
    return (x + m - 1) // m * m


def _nbytes(shape, dtype) -> int:
    n = 1
    for s in shape:
        n *= int(s)
    return n * jnp.dtype(dtype).itemsize


def _vmem_capacity_bytes() -> int:
    """Per-core VMEM capacity; conservative fallback = v7x's 64 MiB per TC."""
    try:
        return int(pltpu.get_tpu_info().vmem_capacity_bytes)
    except Exception:
        return 64 << 20


def _fcnn_decoder_kernel(x_ref, w1_ref, b1_ref, w2_ref, b2_ref, w3_ref, b3_ref,
                         o_ref):
    """Fused 3-layer MLP (Linear + ReLU) on one batch tile.

    Weights are bf16 (MXU input dtype) and VMEM-resident (single-buffered)
    across all grid steps; x is cast to bf16 in-kernel; every dot accumulates
    in f32 and the bias + ReLU epilogue runs in f32 on the VPU.
    """
    cd = w1_ref.dtype  # compute (MXU input) dtype, bf16

    x = x_ref[...].astype(cd)
    h1 = jnp.dot(x, w1_ref[...], preferred_element_type=jnp.float32)
    h1 = jnp.maximum(h1 + b1_ref[...], 0.0)

    h2 = jnp.dot(h1.astype(cd), w2_ref[...], preferred_element_type=jnp.float32)
    h2 = jnp.maximum(h2 + b2_ref[...], 0.0)

    h3 = jnp.dot(h2.astype(cd), w3_ref[...], preferred_element_type=jnp.float32)
    h3 = jnp.maximum(h3 + b3_ref[...], 0.0)

    o_ref[...] = h3.astype(o_ref.dtype)


def prepare_params(params, seq_len, embedding_dim, compute_dtype=jnp.bfloat16):
    """One-time prep: transpose to (in, out), pad hidden/output axes to 128, cast.

    The w1 contraction axis stays at embedding_dim (unpadded) so x can be fed
    to the kernel at its native shape with no per-call pad.  Hidden/output
    axes are zero-padded to 128-multiples; zero weight columns + zero bias
    entries stay exactly 0 through ReLU, so the padding never leaks into the
    real outputs (do not change this padding scheme without re-checking that).
    """
    # TODO(synk): on v7x only, fp8 (e4m3) weight storage would halve resident
    # VMEM; evaluate accuracy vs bf16 before enabling.
    H1p = _round_up(_H1, 128)
    H2p = _round_up(_H2, 128)
    Sp = _round_up(seq_len, 128)

    def wpad(w, in_pad, out_pad):                      # (out,in) -> (in_pad,out_pad)
        wt = jnp.asarray(w, compute_dtype).T
        return jnp.pad(wt, ((0, in_pad - wt.shape[0]),
                            (0, out_pad - wt.shape[1])))

    def bpad(b, out_pad):                              # -> (1, out_pad) f32
        b = jnp.asarray(b, jnp.float32)[None, :]
        return jnp.pad(b, ((0, 0), (0, out_pad - b.shape[1])))

    return {
        "w1": wpad(params["w1"], embedding_dim, H1p),  # (E,   H1p)
        "w2": wpad(params["w2"], H1p, H2p),            # (H1p, H2p)
        "w3": wpad(params["w3"], H2p, Sp),             # (H2p, Sp)
        "b1": bpad(params["b1"], H1p),
        "b2": bpad(params["b2"], H2p),
        "b3": bpad(params["b3"], Sp),
    }


def _pick_batch_tile(B: int) -> int:
    """Batch tile: multiple of 16 (bf16 sublane packing), capped at 512 to
    amortize per-step overhead, and chosen so mid-size batches split into
    >=2 grid steps (the 'parallel' axis then feeds both v7x TensorCores)."""
    TB_CAP = 512
    if B < 64:
        return B                       # single block == full batch dim (always legal)
    if B <= 2 * TB_CAP:
        return min(TB_CAP, _round_up(-(-B // 2), 16))
    return TB_CAP


@functools.partial(jax.jit, static_argnames=("seq_len",))
def fcnn_decoder_forward(x, prepared, *, seq_len):
    """Pallas implementation of FCNNDecoder.forward.

    Args:
      x: (B, embedding_dim) float32 (or bf16) -- fed to the kernel unpadded.
      prepared: output of prepare_params (transposed / padded / bf16 weights).
      seq_len: static output sequence length.
    Returns:
      (B, 1, seq_len) float32.
    """
    B, E = x.shape
    w1, w2, w3 = prepared["w1"], prepared["w2"], prepared["w3"]
    b1, b2, b3 = prepared["b1"], prepared["b2"], prepared["b3"]
    assert w1.shape[0] == E, "prepared params don't match embedding_dim"
    H1p = w1.shape[1]
    H2p = w2.shape[1]
    Sp = w3.shape[1]
    cdt = w1.dtype
    out_dtype = jnp.bfloat16       # halve padded-output writeback; f32 cast after

    TB = _pick_batch_tile(B)
    grid = (-(-B // TB),)          # cdiv; partial last tile -> OOB writes masked

    # VMEM budget from actual buffer_count x block bytes (+ headroom), capped
    # by the device's per-core VMEM capacity (generation-aware).
    resident = (_nbytes((E, H1p), cdt) + _nbytes((H1p, H2p), cdt)
                + _nbytes((H2p, Sp), cdt)
                + _nbytes((8, H1p), jnp.float32)
                + _nbytes((8, H2p), jnp.float32)
                + _nbytes((8, Sp), jnp.float32))
    per_step = (2 * _nbytes((TB, E), x.dtype)            # x (double-buffered)
                + 2 * _nbytes((TB, Sp), out_dtype)        # out (double-buffered)
                + _nbytes((TB, E), cdt)                   # in-kernel bf16 cast of x
                + _nbytes((TB, H1p), jnp.float32) + _nbytes((TB, H1p), cdt)
                + _nbytes((TB, H2p), jnp.float32) + _nbytes((TB, H2p), cdt)
                + _nbytes((TB, Sp), jnp.float32))
    vmem_cap = _vmem_capacity_bytes()
    vmem_limit = min(resident + per_step + (16 << 20), vmem_cap - (4 << 20))
    # TODO(synk): if w1 alone approaches per-core VMEM (very large embedding_dim
    # on a 64 MiB part), switch layer 1 to a K-tiled "arbitrary" grid axis with
    # an f32 accumulator instead of keeping w1 fully resident.

    resident_kw = dict(pipeline_mode=pl.Buffered(1))   # weights/biases: 1 buffer

    out_p = pl.pallas_call(
        _fcnn_decoder_kernel,
        out_shape=jax.ShapeDtypeStruct((B, Sp), out_dtype),
        grid=grid,
        in_specs=[
            pl.BlockSpec((TB, E), lambda i: (i, 0)),                     # x: streamed
            pl.BlockSpec((E, H1p), lambda i: (0, 0), **resident_kw),     # w1
            pl.BlockSpec((1, H1p), lambda i: (0, 0), **resident_kw),     # b1
            pl.BlockSpec((H1p, H2p), lambda i: (0, 0), **resident_kw),   # w2
            pl.BlockSpec((1, H2p), lambda i: (0, 0), **resident_kw),     # b2
            pl.BlockSpec((H2p, Sp), lambda i: (0, 0), **resident_kw),    # w3
            pl.BlockSpec((1, Sp), lambda i: (0, 0), **resident_kw),      # b3
        ],
        out_specs=pl.BlockSpec((TB, Sp), lambda i: (i, 0)),              # lane-dense
        compiler_params=pltpu.CompilerParams(
            dimension_semantics=("parallel",),
            vmem_limit_bytes=int(vmem_limit),
        ),
    )(x, w1, b1, w2, b2, w3, b3)

    # Strip hidden-dim padding, cast back to f32, unsqueeze(1) -> (B, 1, seq_len).
    return out_p[:, :seq_len].astype(jnp.float32)[:, None, :]


def init_params(key, seq_len, embedding_dim):
    """Deterministic init matching nn.Linear parameter shapes (PyTorch conv.)."""
    dims = [(_H1, embedding_dim), (_H2, _H1), (seq_len, _H2)]
    params = {}
    for i, (out_f, in_f) in enumerate(dims, start=1):
        key, kw, kb = jax.random.split(key, 3)
        bound = 1.0 / (in_f ** 0.5)  # same bound PyTorch uses for nn.Linear
        params[f"w{i}"] = jax.random.uniform(
            kw, (out_f, in_f), jnp.float32, -bound, bound)
        params[f"b{i}"] = jax.random.uniform(
            kb, (out_f,), jnp.float32, -bound, bound)
    return params


def _reference_forward(x, params):
    h1 = jax.nn.relu(x @ params["w1"].T + params["b1"])
    h2 = jax.nn.relu(h1 @ params["w2"].T + params["b2"])
    h3 = jax.nn.relu(h2 @ params["w3"].T + params["b3"])
    return h3[:, None, :]


if __name__ == "__main__":
    seq_len = 8
    embedding_dim = 32
    batch = 2

    key = jax.random.PRNGKey(0)
    key, kx = jax.random.split(key)
    x = jax.random.normal(kx, (batch, embedding_dim), jnp.float32)
    params = init_params(key, seq_len, embedding_dim)

    # One-time param prep (transpose + pad + bf16 cast), reused every call.
    prepared = prepare_params(params, seq_len, embedding_dim)
    prepared = jax.tree_util.tree_map(jax.block_until_ready, prepared)

    out = fcnn_decoder_forward(x, prepared, seq_len=seq_len)
    out = jax.block_until_ready(out)

    assert out.shape == (batch, 1, seq_len), out.shape

    # f32 reference; bf16 weight storage + bf16 output store give ~1e-2
    # relative error, so use a correspondingly loose tolerance.
    ref = _reference_forward(x, params)
    max_err = float(jnp.max(jnp.abs(out - ref)))
    assert jnp.allclose(out, ref, atol=4e-2, rtol=4e-2), max_err

    print("KERNEL_OK")
</pallas_src>

<mosaic_0001>
module attributes {stable_mosaic.version = 11 : i64} {
  func.func @_fcnn_decoder_kernel(%arg0: i32, %arg1: memref<2x32xf32, #tpu.memory_space<vmem>>, %arg2: memref<32x2048xbf16, #tpu.memory_space<vmem>>, %arg3: memref<1x2048xf32, #tpu.memory_space<vmem>>, %arg4: memref<2048x512xbf16, #tpu.memory_space<vmem>>, %arg5: memref<1x512xf32, #tpu.memory_space<vmem>>, %arg6: memref<512x128xbf16, #tpu.memory_space<vmem>>, %arg7: memref<1x128xf32, #tpu.memory_space<vmem>>, %arg8: memref<2x128xbf16, #tpu.memory_space<vmem>>) attributes {dimension_semantics = [#tpu.dimension_semantics<parallel>], iteration_bounds = array<i64: 1>, scalar_prefetch = 0 : i64, scratch_operands = 0 : i64, tpu.core_type = #tpu.core_type<tc>, window_params = [{transform_indices = @transform_0, window_bounds = array<i64: 2, 32>}, {pipeline_mode = #tpu.pipeline_mode<synchronous>, transform_indices = @transform_1, window_bounds = array<i64: 32, 2048>}, {pipeline_mode = #tpu.pipeline_mode<synchronous>, transform_indices = @transform_2, window_bounds = array<i64: 1, 2048>}, {pipeline_mode = #tpu.pipeline_mode<synchronous>, transform_indices = @transform_3, window_bounds = array<i64: 2048, 512>}, {pipeline_mode = #tpu.pipeline_mode<synchronous>, transform_indices = @transform_4, window_bounds = array<i64: 1, 512>}, {pipeline_mode = #tpu.pipeline_mode<synchronous>, transform_indices = @transform_5, window_bounds = array<i64: 512, 128>}, {pipeline_mode = #tpu.pipeline_mode<synchronous>, transform_indices = @transform_6, window_bounds = array<i64: 1, 128>}, {transform_indices = @transform_7, window_bounds = array<i64: 2, 128>}]} {
    %c0 = arith.constant 0 : index
    %c0_0 = arith.constant 0 : index
    %0 = vector.load %arg1[%c0, %c0_0] : memref<2x32xf32, #tpu.memory_space<vmem>>, vector<2x32xf32>
    %1 = arith.truncf %0 : vector<2x32xf32> to vector<2x32xbf16>
    %c0_1 = arith.constant 0 : index
    %c0_2 = arith.constant 0 : index
    %2 = vector.load %arg2[%c0_1, %c0_2] : memref<32x2048xbf16, #tpu.memory_space<vmem>>, vector<32x2048xbf16>
    %cst = arith.constant dense<0.000000e+00> : vector<2x2048xf32>
    %3 = tpu.matmul %1, %2, %cst {dimension_numbers = #tpu.dot_dimension_numbers<[1], [0], [0], [1], [0, 0, 1, 1], [], []>} : vector<2x32xbf16>, vector<32x2048xbf16>, vector<2x2048xf32> -> vector<2x2048xf32>
    %c0_3 = arith.constant 0 : index
    %c0_4 = arith.constant 0 : index
    %4 = vector.load %arg3[%c0_3, %c0_4] : memref<1x2048xf32, #tpu.memory_space<vmem>>, vector<1x2048xf32>
    %5 = vector.broadcast %4 : vector<1x2048xf32> to vector<2x2048xf32>
    %6 = arith.addf %3, %5 : vector<2x2048xf32>
    %cst_5 = arith.constant 0.000000e+00 : f32
    %7 = vector.broadcast %cst_5 : f32 to vector<2x2048xf32>
    %8 = arith.maximumf %6, %7 : vector<2x2048xf32>
    %9 = arith.truncf %8 : vector<2x2048xf32> to vector<2x2048xbf16>
    %c0_6 = arith.constant 0 : index
    %c0_7 = arith.constant 0 : index
    %10 = vector.load %arg4[%c0_6, %c0_7] : memref<2048x512xbf16, #tpu.memory_space<vmem>>, vector<2048x512xbf16>
    %cst_8 = arith.constant dense<0.000000e+00> : vector<2x512xf32>
    %11 = tpu.matmul %9, %10, %cst_8 {dimension_numbers = #tpu.dot_dimension_numbers<[1], [0], [0], [1], [0, 0, 1, 1], [], []>} : vector<2x2048xbf16>, vector<2048x512xbf16>, vector<2x512xf32> -> vector<2x512xf32>
    %c0_9 = arith.constant 0 : index
    %c0_10 = arith.constant 0 : index
    %12 = vector.load %arg5[%c0_9, %c0_10] : memref<1x512xf32, #tpu.memory_space<vmem>>, vector<1x512xf32>
    %13 = vector.broadcast %12 : vector<1x512xf32> to vector<2x512xf32>
    %14 = arith.addf %11, %13 : vector<2x512xf32>
    %cst_11 = arith.constant 0.000000e+00 : f32
    %15 = vector.broadcast %cst_11 : f32 to vector<2x512xf32>
    %16 = arith.maximumf %14, %15 : vector<2x512xf32>
    %17 = arith.truncf %16 : vector<2x512xf32> to vector<2x512xbf16>
    %c0_12 = arith.constant 0 : index
    %c0_13 = arith.constant 0 : index
    %18 = vector.load %arg6[%c0_12, %c0_13] : memref<512x128xbf16, #tpu.memory_space<vmem>>, vector<512x128xbf16>
    %cst_14 = arith.constant dense<0.000000e+00> : vector<2x128xf32>
    %19 = tpu.matmul %17, %18, %cst_14 {dimension_numbers = #tpu.dot_dimension_numbers<[1], [0], [0], [1], [0, 0, 1, 1], [], []>} : vector<2x512xbf16>, vector<512x128xbf16>, vector<2x128xf32> -> vector<2x128xf32>
    %c0_15 = arith.constant 0 : index
    %c0_16 = arith.constant 0 : index
    %20 = vector.load %arg7[%c0_15, %c0_16] : memref<1x128xf32, #tpu.memory_space<vmem>>, vector<1x128xf32>
    %21 = vector.broadcast %20 : vector<1x128xf32> to vector<2x128xf32>
    %22 = arith.addf %19, %21 : vector<2x128xf32>
    %cst_17 = arith.constant 0.000000e+00 : f32
    %23 = vector.broadcast %cst_17 : f32 to vector<2x128xf32>
    %24 = arith.maximumf %22, %23 : vector<2x128xf32>
    %25 = arith.truncf %24 : vector<2x128xf32> to vector<2x128xbf16>
    %c0_18 = arith.constant 0 : index
    %c0_19 = arith.constant 0 : index
    %26 = vector.load %arg8[%c0_18, %c0_19] : memref<2x128xbf16, #tpu.memory_space<vmem>>, vector<2x128xbf16>
    tpu.vector_store %arg8[%c0_18, %c0_19], %25 {strides = array<i32>} : memref<2x128xbf16, #tpu.memory_space<vmem>>, vector<2x128xbf16>,
    return
  }
  func.func @transform_0(%arg0: i32) -> (i32, i32) {
    %c0_i32 = arith.constant 0 : i32
    %c0_i32_0 = arith.constant 0 : i32
    return %arg0, %c0_i32 : i32, i32
  }
  func.func @transform_1(%arg0: i32) -> (i32, i32) {
    %c0_i32 = arith.constant 0 : i32
    %c0_i32_0 = arith.constant 0 : i32
    %c0_i32_1 = arith.constant 0 : i32
    return %c0_i32, %c0_i32_0 : i32, i32
  }
  func.func @transform_2(%arg0: i32) -> (i32, i32) {
    %c0_i32 = arith.constant 0 : i32
    %c0_i32_0 = arith.constant 0 : i32
    %c0_i32_1 = arith.constant 0 : i32
    return %c0_i32, %c0_i32_0 : i32, i32
  }
  func.func @transform_3(%arg0: i32) -> (i32, i32) {
    %c0_i32 = arith.constant 0 : i32
    %c0_i32_0 = arith.constant 0 : i32
    %c0_i32_1 = arith.constant 0 : i32
    return %c0_i32, %c0_i32_0 : i32, i32
  }
  func.func @transform_4(%arg0: i32) -> (i32, i32) {
    %c0_i32 = arith.constant 0 : i32
    %c0_i32_0 = arith.constant 0 : i32
    %c0_i32_1 = arith.constant 0 : i32
    return %c0_i32, %c0_i32_0 : i32, i32
  }
  func.func @transform_5(%arg0: i32) -> (i32, i32) {
    %c0_i32 = arith.constant 0 : i32
    %c0_i32_0 = arith.constant 0 : i32
    %c0_i32_1 = arith.constant 0 : i32
    return %c0_i32, %c0_i32_0 : i32, i32
  }
  func.func @transform_6(%arg0: i32) -> (i32, i32) {
    %c0_i32 = arith.constant 0 : i32
    %c0_i32_0 = arith.constant 0 : i32
    %c0_i32_1 = arith.constant 0 : i32
    return %c0_i32, %c0_i32_0 : i32, i32
  }
  func.func @transform_7(%arg0: i32) -> (i32, i32) {
    %c0_i32 = arith.constant 0 : i32
    %c0_i32_0 = arith.constant 0 : i32
    return %arg0, %c0_i32 : i32, i32
  }
}

</mosaic_0001>

<bundles_post_ra>
// kernel: fcnn_decoder_forward.1
= control target key start
LH: loop header
LB: loop body
LE: loop exit
PB: predicated region body
PF: predicated region fallthrough
CT: control target
= control target key end

     0   :  { %12 = vsyncpa [#allocation3], 0  ;;  %s6806_s0 = inlined_call_operand.hbm [shape: f32[2,32], index: 0, kind: input, shape index: {}]   ;;  %s6807_s1 = inlined_call_operand.hbm [shape: bf16[32,2048], index: 1, kind: input, shape index: {}]   ;;  %s6808_s2 = inlined_call_operand.hbm [shape: f32[1,2048], index: 2, kind: input, shape index: {}]   ;;  %s6809_s3 = inlined_call_operand.hbm [shape: bf16[2048,512], index: 3, kind: input, shape index: {}]   ;;  %s6810_s4 = inlined_call_operand.hbm [shape: f32[1,512], index: 4, kind: input, shape index: {}]   ;;  %s6811_s5 = inlined_call_operand.hbm [shape: bf16[512,128], index: 5, kind: input, shape index: {}]   ;;  %s6812_s6 = inlined_call_operand.hbm [shape: f32[1,128], index: 6, kind: input, shape index: {}]   ;;  %s6813_s7 = inlined_call_operand.vmem [shape: bf16[2,128], index: 7, kind: output, shape index: {}]  }
   0x1   :  { %13 = vsyncpa [#allocation5], 0 }
   0x2   :  { %14 = vsyncpa [#allocation8], 0 }
   0x3   :  { %15 = vsyncpa [#allocation11], 0  ;;  %s6534_s24 = smov [#allocation4]   ;;  %s6372_s28 = scalar_lea.hbm %s6807_s1, 4096 }
   0x4   :  { %s31_s25 = sshll.u32 %s6534_s24, 4  ;;  %p6373_p0 = scmp.ne.s32.totalorder %s6807_s1, %s6372_s28  ;;  %s32_s25 = int_to_ptr.vmem [resolvable:$true] %s31_s25 }
   0x5   :  { %p6376_p1 = scmp.lt.u32.totalorder %s6372_s28, %s6807_s1 }
   0x7   :  { %p6378_p2 = pnand %p6376_p1, %p6373_p0 }
   0x9   :  { %6381 = shalt.err (!%p6378_p2)
}
   0xa   :  { %s6382_s10 = scalar_lea.vmem %s32_s25, 4096  ;;  %p6387_p4 = scmp.lt.s32.totalorder %s32_s25, %s32_s25 }
   0xb   :  { %p6383_p3 = scmp.ne.s32.totalorder %s32_s25, %s6382_s10  ;;  %p6388_p5 = scmp.lt.s32.totalorder %s6382_s10, %s6382_s10 }
   0xd   :  { %p6389_p6 = por %p6388_p5, %p6387_p4 }
   0xf   :  { %p6390_p7 = pnand %p6389_p6, %p6383_p3 }
  0x11   :  { %6393 = shalt.err (!%p6390_p7)
}
  0x12   :  { %s6535_s11 = smov 1024   ;;  %s6536_s12 = smov 64  }
  0x13   :  { %37 = dma.hbm_to_vmem [thread:$0]  %s6807_s1, 4096, %s32_s25, [#allocation5], %s6535_s11, %s6535_s11, %s6536_s12  }
  0x14   :  { %s6537_s15 = smov [#allocation7]   ;;  %s6394_s19 = scalar_lea.hbm %s6809_s3, 65536 }
  0x15   :  { %s53_s16 = sshll.u32 %s6537_s15, 4  ;;  %p6395_p8 = scmp.ne.s32.totalorder %s6809_s3, %s6394_s19  ;;  %s54_s16 = int_to_ptr.vmem [resolvable:$true] %s53_s16 }
  0x16   :  { %p6398_p9 = scmp.lt.u32.totalorder %s6394_s19, %s6809_s3 }
  0x18   :  { %p6400_p10 = pnand %p6398_p9, %p6395_p8 }
  0x1a   :  { %6403 = shalt.err (!%p6400_p10)
}
  0x1b   :  { %s6404_s24 = scalar_lea.vmem %s54_s16, 65536  ;;  %p6409_p12 = scmp.lt.s32.totalorder %s54_s16, %s54_s16 }
  0x1c   :  { %p6405_p11 = scmp.ne.s32.totalorder %s54_s16, %s6404_s24  ;;  %p6410_p13 = scmp.lt.s32.totalorder %s6404_s24, %s6404_s24 }
  0x1e   :  { %p6411_p0 = por %p6410_p13, %p6409_p12 }
  0x20   :  { %p6412_p1 = pnand %p6411_p0, %p6405_p11 }
  0x22   :  { %6415 = shalt.err (!%p6412_p1)
}
  0x23   :  { %s6538_s1 = smov 256   ;;  %s6539_s25 = smov 16  }
  0x24   :  { %59 = dma.hbm_to_vmem [thread:$0]  %s6809_s3, 65536, %s54_s16, [#allocation8], %s6538_s1, %s6538_s1, %s6539_s25  }
  0x25   :  { %s6540_s28 = smov [#allocation10]   ;;  %s6541_s30 = smov [#allocation2]  }
  0x26   :  { %s75_s29 = sshll.u32 %s6540_s28, 4  ;;  %s22_s8 = sshll.u32 %s6541_s30, 4  ;;  %s76_s29 = int_to_ptr.vmem [resolvable:$true] %s75_s29  ;;  %s23_s8 = int_to_ptr.vmem [resolvable:$true] %s22_s8 }
  0x27   :  { %s6416_s11 = scalar_lea.hbm %s6811_s5, 4096 }
  0x28   :  { %p6417_p2 = scmp.ne.s32.totalorder %s6811_s5, %s6416_s11  ;;  %p6420_p3 = scmp.lt.u32.totalorder %s6416_s11, %s6811_s5 }
  0x2a   :  { %p6422_p4 = pnand %p6420_p3, %p6417_p2 }
  0x2c   :  { %6425 = shalt.err (!%p6422_p4)
}
  0x2d   :  { %s6426_s3 = scalar_lea.vmem %s76_s29, 4096  ;;  %p6431_p6 = scmp.lt.s32.totalorder %s76_s29, %s76_s29 }
  0x2e   :  { %p6427_p5 = scmp.ne.s32.totalorder %s76_s29, %s6426_s3  ;;  %p6432_p7 = scmp.lt.s32.totalorder %s6426_s3, %s6426_s3 }
  0x30   :  { %p6433_p8 = por %p6432_p7, %p6431_p6 }
  0x32   :  { %p6434_p9 = pnand %p6433_p8, %p6427_p5 }
  0x34   :  { %6437 = shalt.err (!%p6434_p9)
}
  0x35   :  { %s6542_s16 = smov 4   ;;  %s6438_s22 = scalar_lea.hbm %s6806_s0, 32 }
  0x36   :  { %81 = dma.hbm_to_vmem [thread:$0]  %s6811_s5, 4096, %s76_s29, [#allocation11], %s6536_s12, %s6536_s12, %s6542_s16  }
  0x37   :  { %p6439_p10 = scmp.ne.s32.totalorder %s6806_s0, %s6438_s22  ;;  %p6442_p11 = scmp.lt.u32.totalorder %s6438_s22, %s6806_s0 }
  0x39   :  { %p6444_p12 = pnand %p6442_p11, %p6439_p10 }
  0x3b   :  { %6447 = shalt.err (!%p6444_p12)
}
  0x3c   :  { %s6448_s26 = scalar_lea.vmem %s23_s8, 32  ;;  %p6453_p0 = scmp.lt.s32.totalorder %s23_s8, %s23_s8 }
  0x3d   :  { %p6449_p13 = scmp.ne.s32.totalorder %s23_s8, %s6448_s26  ;;  %p6454_p1 = scmp.lt.s32.totalorder %s6448_s26, %s6448_s26 }
  0x3f   :  { %p6455_p2 = por %p6454_p1, %p6453_p0 }
  0x41   :  { %p6456_p3 = pnand %p6455_p2, %p6449_p13 }
  0x43   :  { %6459 = shalt.err (!%p6456_p3)
}
  0x44   :  { %25 = dma.hbm_to_vmem [thread:$0]  %s6806_s0, 32, %s23_s8, [#allocation3]  }
  0x45   :  { %s6543_s27 = smov [#allocation6]   ;;  %s6544_s29 = smov [#allocation9]  }
  0x46   :  { %s44_s28 = sshll.u32 %s6543_s27, 4  ;;  %s66_s30 = sshll.u32 %s6544_s29, 4  ;;  %s45_s28 = int_to_ptr.vmem [resolvable:$true] %s44_s28  ;;  %s67_s30 = int_to_ptr.vmem [resolvable:$true] %s66_s30 }
  0x47   :  { %s6460_s11 = scalar_lea.hbm %s6808_s2, 256 }
  0x48   :  { %p6461_p4 = scmp.ne.s32.totalorder %s6808_s2, %s6460_s11  ;;  %p6464_p5 = scmp.lt.u32.totalorder %s6460_s11, %s6808_s2 }
  0x4a   :  { %p6466_p6 = pnand %p6464_p5, %p6461_p4 }
  0x4c   :  { %6469 = shalt.err (!%p6466_p6)
}
  0x4d   :  { %s6470_s0 = scalar_lea.vmem %s45_s28, 256  ;;  %p6475_p8 = scmp.lt.s32.totalorder %s45_s28, %s45_s28 }
  0x4e   :  { %p6471_p7 = scmp.ne.s32.totalorder %s45_s28, %s6470_s0  ;;  %p6476_p9 = scmp.lt.s32.totalorder %s6470_s0, %s6470_s0 }
  0x50   :  { %p6477_p10 = por %p6476_p9, %p6475_p8 }
  0x52   :  { %p6478_p11 = pnand %p6477_p10, %p6471_p7 }
  0x54   :  { %6481 = shalt.err (!%p6478_p11)
}
  0x55   :  { %47 = dma.hbm_to_vmem [thread:$0]  %s6808_s2, 256, %s45_s28, [#allocation5]  }
  0x56   :  { %s6482_s19 = scalar_lea.hbm %s6810_s4, 64 }
  0x57   :  { %p6483_p12 = scmp.ne.s32.totalorder %s6810_s4, %s6482_s19  ;;  %p6486_p13 = scmp.lt.u32.totalorder %s6482_s19, %s6810_s4 }
  0x59   :  { %p6488_p0 = pnand %p6486_p13, %p6483_p12 }
  0x5b   :  { %6491 = shalt.err (!%p6488_p0)
}
  0x5c   :  { %s6492_s24 = scalar_lea.vmem %s67_s30, 64  ;;  %p6497_p2 = scmp.lt.s32.totalorder %s67_s30, %s67_s30 }
  0x5d   :  { %p6493_p1 = scmp.ne.s32.totalorder %s67_s30, %s6492_s24  ;;  %p6498_p3 = scmp.lt.s32.totalorder %s6492_s24, %s6492_s24 }
  0x5f   :  { %p6499_p4 = por %p6498_p3, %p6497_p2 }
  0x61   :  { %p6500_p5 = pnand %p6499_p4, %p6493_p1 }
  0x63   :  { %6503 = shalt.err (!%p6500_p5)
}
  0x64   :  { %69 = dma.hbm_to_vmem [thread:$0]  %s6810_s4, 64, %s67_s30, [#allocation8]  }
  0x65   :  { %s6545_s25 = smov [#allocation12]   ;;  %s6504_s27 = scalar_lea.hbm %s6812_s6, 16 }
  0x66   :  { %s88_s26 = sshll.u32 %s6545_s25, 4  ;;  %p6505_p6 = scmp.ne.s32.totalorder %s6812_s6, %s6504_s27  ;;  %s89_s26 = int_to_ptr.vmem [resolvable:$true] %s88_s26 }
  0x67   :  { %p6508_p7 = scmp.lt.u32.totalorder %s6504_s27, %s6812_s6 }
  0x69   :  { %p6510_p8 = pnand %p6508_p7, %p6505_p6 }
  0x6b   :  { %6513 = shalt.err (!%p6510_p8)
}
  0x6c   :  { %s6514_s11 = scalar_lea.vmem %s89_s26, 16  ;;  %s6518_s4 = scalar_lea.vmem %s89_s26, 32 }
  0x6d   :  { %p6515_p9 = scmp.ne.s32.totalorder %s89_s26, %s6514_s11  ;;  %p6519_p10 = scmp.lt.s32.totalorder %s89_s26, %s89_s26 }
  0x6e   :  { %p6520_p11 = scmp.lt.s32.totalorder %s6518_s4, %s6514_s11 }
  0x70   :  { %p6521_p12 = por %p6520_p11, %p6519_p10 }
  0x72   :  { %p6522_p13 = pnand %p6521_p12, %p6515_p9 }
  0x74   :  { %6525 = shalt.err (!%p6522_p13)
}
  0x75   :  { %91 = dma.hbm_to_vmem [thread:$0]  %s6812_s6, 16, %s89_s26, [#allocation11]  }
  0x76   :  { %6526 = dma.done.wait [#allocation3], 32  }
  0x77   :  { %6527 = vsyncadd [#allocation3], 4294967264 }
  0x78   :  { %6528 = dma.done.wait [#allocation5], 4352  }
  0x79   :  { %6529 = vsyncadd [#allocation5], 4294962944 }
  0x7a   :  { %6530 = dma.done.wait [#allocation8], 65600  }
  0x7b   :  { %6531 = vsyncadd [#allocation8], 4294901696 }
  0x7c   :  { %6532 = dma.done.wait [#allocation11], 4112  }
  0x7d   :  { %6533 = vsyncadd [#allocation11], 4294963184  ;;  %v6546_v0 = vmov 0   ;;  %v116_v1 = vld [vmem:[#allocation4] sm:$0xff]  ;;  %v117_v7 = vld [vmem:[#allocation4 + $0x8] sm:$0xff]  ;;  %vm392_vm0 = vcmask 261120  }
  0x7e   :  { %428 = vmatprep.mubr.bf16.mxu0 %v6546_v0  ;;  %469 = vmatprep.mubr.bf16.mxu1 %v6546_v0  ;;  %v124_v2 = vld [vmem:[#allocation4 + $0x40] sm:$0xff]  ;;  %v125_v9 = vld [vmem:[#allocation4 + $0x48] sm:$0xff]  ;;  %v118_v15 = vld [vmem:[#allocation4 + $0x10] sm:$0xff] }
  0x7f   :  { %v132_v3 = vld [vmem:[#allocation4 + $0x80] sm:$0xff]  ;;  %v4869_v4 = vcombine.high %v116_v1, %v124_v2  ;;  %v4868_v5 = vcombine.low %v116_v1, %v124_v2  ;;  %v133_v10 = vld [vmem:[#allocation4 + $0x88] sm:$0xff]  ;;  %v4871_v12 = vcombine.high %v117_v7, %v125_v9  ;;  %v4870_v13 = vcombine.low %v117_v7, %v125_v9  ;;  %v126_v16 = vld [vmem:[#allocation4 + $0x50] sm:$0xff] }
  0x80   :  { %v140_v6 = vld [vmem:[#allocation4 + $0xc0] sm:$0xff]  ;;  %v141_v11 = vld [vmem:[#allocation4 + $0xc8] sm:$0xff]  ;;  %v114_v18 = vld [vmem:[#allocation2] sm:$0x3]  ;;  %v4873_v21 = vcombine.high %v118_v15, %v126_v16  ;;  %v4872_v27 = vcombine.low %v118_v15, %v126_v16 }
  0x81   :  { %v4885_v8 = vcombine.high %v132_v3, %v140_v6  ;;  %396 = vmatprep.subr.bf16.mxu0 %v4869_v4  ;;  %v4887_v14 = vcombine.high %v133_v10, %v141_v11  ;;  %v4884_v17 = vcombine.low %v132_v3, %v140_v6  ;;  %v119_v19 = vld [vmem:[#allocation4 + $0x18] sm:$0xff]  ;;  %437 = vmatprep.subr.bf16.mxu1 %v4871_v12  ;;  %v134_v23 = vld [vmem:[#allocation4 + $0x90] sm:$0xff]  ;;  %v120_v32 = vld [vmem:[#allocation4 + $0x20] sm:$0xff] }
  0x82   :  { %397 = vmatpush1.bf16.msra.mxu0 %v4868_v5  ;;  %v127_v20 = vld [vmem:[#allocation4 + $0x58] sm:$0xff]  ;;  %438 = vmatpush1.bf16.msra.mxu1 %v4870_v13  ;;  %v4886_v22 = vcombine.low %v133_v10, %v141_v11  ;;  %v142_v24 = vld [vmem:[#allocation4 + $0xd0] sm:$0xff]  ;;  %v6676_v25 = vpack.c.bf16 %v114_v18, %v114_v18  ;;  %v128_v33 = vld [vmem:[#allocation4 + $0x60] sm:$0xff] }
  0x83   :  { %398 = vmatprep.subr.bf16.mxu0 %v4885_v8  ;;  %439 = vmatprep.subr.bf16.mxu1 %v4887_v14  ;;  %v4875_v26 = vcombine.high %v119_v19, %v127_v20  ;;  %v135_v28 = vld [vmem:[#allocation4 + $0x98] sm:$0xff]  ;;  %v4889_v30 = vcombine.high %v134_v23, %v142_v24  ;;  %v4874_v31 = vcombine.low %v119_v19, %v127_v20  ;;  %v121_v35 = vld [vmem:[#allocation4 + $0x28] sm:$0xff]  ;;  %v136_v40 = vld [vmem:[#allocation4 + $0xa0] sm:$0xff] }
  0x84   :  { %v143_v29 = vld [vmem:[#allocation4 + $0xd8] sm:$0xff]  ;;  %v4888_v36 = vcombine.low %v134_v23, %v142_v24  ;;  %v129_v37 = vld [vmem:[#allocation4 + $0x68] sm:$0xff]  ;;  %v4877_v38 = vcombine.high %v120_v32, %v128_v33  ;;  %v144_v41 = vld [vmem:[#allocation4 + $0xe0] sm:$0xff]  ;;  %v4876_v44 = vcombine.low %v120_v32, %v128_v33 }
  0x85   :  { %v4891_v34 = vcombine.high %v135_v28, %v143_v29  ;;  %v4890_v39 = vcombine.low %v135_v28, %v143_v29  ;;  %v4879_v42 = vcombine.high %v121_v35, %v129_v37  ;;  %v137_v43 = vld [vmem:[#allocation4 + $0xa8] sm:$0xff]  ;;  %v4893_v46 = vcombine.high %v136_v40, %v144_v41  ;;  %v122_v48 = vld [vmem:[#allocation4 + $0x30] sm:$0xff]  ;;  %v123_v51 = vld [vmem:[#allocation4 + $0x38] sm:$0xff] }
  0x86   :  { %399 = vmatpush1.bf16.msra.mxu0 %v4884_v17  ;;  %440 = vmatpush1.bf16.msra.mxu1 %v4886_v22  ;;  %v145_v45 = vld [vmem:[#allocation4 + $0xe8] sm:$0xff]  ;;  %v4878_v47 = vcombine.low %v121_v35, %v129_v37  ;;  %v130_v49 = vld [vmem:[#allocation4 + $0x70] sm:$0xff]  ;;  %v4892_v52 = vcombine.low %v136_v40, %v144_v41  ;;  %v131_v53 = vld [vmem:[#allocation4 + $0x78] sm:$0xff] }
  0x87   :  { %478 = vmatprep.subr.bf16.mxu0 %v4873_v21  ;;  %519 = vmatprep.subr.bf16.mxu1 %v4875_v26  ;;  %v4895_v50 = vcombine.high %v137_v43, %v145_v45  ;;  %v4881_v54 = vcombine.high %v122_v48, %v130_v49  ;;  %v4894_v55 = vcombine.low %v137_v43, %v145_v45  ;;  %v138_v56 = vld [vmem:[#allocation4 + $0xb0] sm:$0xff]  ;;  %v139_v59 = vld [vmem:[#allocation4 + $0xb8] sm:$0xff] }
  0x88   :  { %v146_v57 = vld [vmem:[#allocation4 + $0xf0] sm:$0xff]  ;;  %v4883_v58 = vcombine.high %v123_v51, %v131_v53  ;;  %v4880_v60 = vcombine.low %v122_v48, %v130_v49  ;;  %v147_v61 = vld [vmem:[#allocation4 + $0xf8] sm:$0xff]  ;;  %v4882_v63 = vcombine.low %v123_v51, %v131_v53 }
  0x89   :  { %4900 = vmatmul.mubr.msk.bf16.vlgmr.msra.gmra.mrb[0].mxu0 %vm392_vm0, %v6676_v25  ;;  %4901 = vmatmul.mubr.msk.bf16.vlgmr.msra.gmra.mrb[0].mxu1 %vm392_vm0, %v6676_v25  ;;  %v4897_v62 = vcombine.high %v138_v56, %v146_v57  ;;  %v4899_v1 = vcombine.high %v139_v59, %v147_v61  ;;  %v4896_v2 = vcombine.low %v138_v56, %v146_v57  ;;  %v5572_v3 = vld [vmem:[#allocation7 + $0x4] ss:$16 sps:$4 sm:$0xff]   ;;  %v5575_v5 = vld [vmem:[#allocation7 + $0xc] ss:$16 sps:$4 sm:$0xff]   ;;  %v5570_v6 = vld [vmem:[#allocation7] ss:$16 sps:$4 sm:$0xff]  }
  0x8a   :  { %479 = vmatpush1.bf16.msra.mxu0 %v4872_v27  ;;  %510 = vmatprep.mubr.bf16.mxu0 %v6546_v0  ;;  %v4898_v4 = vcombine.low %v139_v59, %v147_v61  ;;  %v5578_v7 = vld [vmem:[#allocation7 + $0x24] ss:$16 sps:$4 sm:$0xff]   ;;  %v5573_v8 = vld [vmem:[#allocation7 + $0x8] ss:$16 sps:$4 sm:$0xff]   ;;  %v5581_v9 = vld [vmem:[#allocation7 + $0x2c] ss:$16 sps:$4 sm:$0xff]  }
  0x8b   :  { %480 = vmatprep.subr.bf16.mxu0 %v4889_v30  ;;  %520 = vmatpush1.bf16.msra.mxu1 %v4874_v31  ;;  %v5576_v10 = vld [vmem:[#allocation7 + $0x20] ss:$16 sps:$4 sm:$0xff]   ;;  %v5579_v11 = vld [vmem:[#allocation7 + $0x28] ss:$16 sps:$4 sm:$0xff]   ;;  %v5587_v12 = vld [vmem:[#allocation7 + $0x4c] ss:$16 sps:$4 sm:$0xff]  }
  0x8c   :  { %551 = vmatprep.mubr.bf16.mxu1 %v6546_v0  ;;  %521 = vmatprep.subr.bf16.mxu1 %v4891_v34  ;;  %v5582_v13 = vld [vmem:[#allocation7 + $0x40] ss:$16 sps:$4 sm:$0xff]   ;;  %v5590_v14 = vld [vmem:[#allocation7 + $0x64] ss:$16 sps:$4 sm:$0xff]   ;;  %v5585_v15 = vld [vmem:[#allocation7 + $0x48] ss:$16 sps:$4 sm:$0xff]  }
  0x8d   :  { %v5593_v16 = vld [vmem:[#allocation7 + $0x6c] ss:$16 sps:$4 sm:$0xff]   ;;  %v5588_v17 = vld [vmem:[#allocation7 + $0x60] ss:$16 sps:$4 sm:$0xff]   ;;  %v5596_v18 = vld [vmem:[#allocation7 + $0x84] ss:$16 sps:$4 sm:$0xff]  }
  0x8e   :  { %481 = vmatpush1.bf16.msra.mxu0 %v4888_v36  ;;  %v5591_v19 = vld [vmem:[#allocation7 + $0x68] ss:$16 sps:$4 sm:$0xff]   ;;  %v5594_v20 = vld [vmem:[#allocation7 + $0x80] ss:$16 sps:$4 sm:$0xff]   ;;  %v5599_v21 = vld [vmem:[#allocation7 + $0x8c] ss:$16 sps:$4 sm:$0xff]  }
  0x8f   :  { %560 = vmatprep.subr.bf16.mxu0 %v4877_v38  ;;  %522 = vmatpush1.bf16.msra.mxu1 %v4890_v39  ;;  %v5597_v22 = vld [vmem:[#allocation7 + $0x88] ss:$16 sps:$4 sm:$0xff]   ;;  %v5602_v23 = vld [vmem:[#allocation7 + $0xa4] ss:$16 sps:$4 sm:$0xff]   ;;  %v5605_v24 = vld [vmem:[#allocation7 + $0xac] ss:$16 sps:$4 sm:$0xff]  }
  0x90   :  { %601 = vmatprep.subr.bf16.mxu1 %v4879_v42  ;;  %v5608_v26 = vld [vmem:[#allocation7 + $0xc4] ss:$16 sps:$4 sm:$0xff]   ;;  %v5603_v27 = vld [vmem:[#allocation7 + $0xa8] ss:$16 sps:$4 sm:$0xff]   ;;  %v5611_v28 = vld [vmem:[#allocation7 + $0xcc] ss:$16 sps:$4 sm:$0xff]  }
  0x91   :  { %4902 = vmatmul.mubr.msk.bf16.vlgmr.msra.gmra.mrb[4].mxu0 %vm392_vm0, %v6676_v25  ;;  %v5606_v29 = vld [vmem:[#allocation7 + $0xc0] ss:$16 sps:$4 sm:$0xff]   ;;  %v5614_v30 = vld [vmem:[#allocation7 + $0xe4] ss:$16 sps:$4 sm:$0xff]   ;;  %v5609_v31 = vld [vmem:[#allocation7 + $0xc8] ss:$16 sps:$4 sm:$0xff]  }
  0x92   :  { %561 = vmatpush1.bf16.msra.mxu0 %v4876_v44  ;;  %592 = vmatprep.mubr.bf16.mxu0 %v6546_v0  ;;  %v5617_v32 = vld [vmem:[#allocation7 + $0xec] ss:$16 sps:$4 sm:$0xff]   ;;  %v5612_v33 = vld [vmem:[#allocation7 + $0xe0] ss:$16 sps:$4 sm:$0xff]   ;;  %v5620_v34 = vld [vmem:[#allocation7 + $0x104] ss:$16 sps:$4 sm:$0xff]  }
  0x93   :  { %4903 = vmatmul.mubr.msk.bf16.vlgmr.msra.gmra.mrb[4].mxu1 %vm392_vm0, %v6676_v25  ;;  %562 = vmatprep.subr.bf16.mxu0 %v4893_v46  ;;  %v5615_v35 = vld [vmem:[#allocation7 + $0xe8] ss:$16 sps:$4 sm:$0xff]   ;;  %v5623_v36 = vld [vmem:[#allocation7 + $0x10c] ss:$16 sps:$4 sm:$0xff]   ;;  %v5618_v37 = vld [vmem:[#allocation7 + $0x100] ss:$16 sps:$4 sm:$0xff]  }
  0x94   :  { %602 = vmatpush1.bf16.msra.mxu1 %v4878_v47  ;;  %633 = vmatprep.mubr.bf16.mxu1 %v6546_v0  ;;  %v5626_v38 = vld [vmem:[#allocation7 + $0x124] ss:$16 sps:$4 sm:$0xff]   ;;  %v5621_v39 = vld [vmem:[#allocation7 + $0x108] ss:$16 sps:$4 sm:$0xff]   ;;  %v5629_v40 = vld [vmem:[#allocation7 + $0x12c] ss:$16 sps:$4 sm:$0xff]  }
  0x95   :  { %603 = vmatprep.subr.bf16.mxu1 %v4895_v50  ;;  %v5624_v41 = vld [vmem:[#allocation7 + $0x120] ss:$16 sps:$4 sm:$0xff]   ;;  %v5632_v42 = vld [vmem:[#allocation7 + $0x144] ss:$16 sps:$4 sm:$0xff]   ;;  %v5627_v43 = vld [vmem:[#allocation7 + $0x128] ss:$16 sps:$4 sm:$0xff]  }
  0x96   :  { %563 = vmatpush1.bf16.msra.mxu0 %v4892_v52  ;;  %v5635_v44 = vld [vmem:[#allocation7 + $0x14c] ss:$16 sps:$4 sm:$0xff]   ;;  %v5630_v45 = vld [vmem:[#allocation7 + $0x140] ss:$16 sps:$4 sm:$0xff]   ;;  %v5638_v46 = vld [vmem:[#allocation7 + $0x164] ss:$16 sps:$4 sm:$0xff]  }
  0x97   :  { %642 = vmatprep.subr.bf16.mxu0 %v4881_v54  ;;  %v5633_v47 = vld [vmem:[#allocation7 + $0x148] ss:$16 sps:$4 sm:$0xff]   ;;  %v5641_v48 = vld [vmem:[#allocation7 + $0x16c] ss:$16 sps:$4 sm:$0xff]   ;;  %v5636_v49 = vld [vmem:[#allocation7 + $0x160] ss:$16 sps:$4 sm:$0xff]  }
  0x98   :  { %604 = vmatpush1.bf16.msra.mxu1 %v4894_v55  ;;  %v5644_v50 = vld [vmem:[#allocation7 + $0x184] ss:$16 sps:$4 sm:$0xff]   ;;  %v5639_v51 = vld [vmem:[#allocation7 + $0x168] ss:$16 sps:$4 sm:$0xff]   ;;  %v5647_v52 = vld [vmem:[#allocation7 + $0x18c] ss:$16 sps:$4 sm:$0xff]  }
  0x99   :  { %4904 = vmatmul.mubr.msk.bf16.vlgmr.msra.gmra.mrb[8].mxu0 %vm392_vm0, %v6676_v25  ;;  %683 = vmatprep.subr.bf16.mxu1 %v4883_v58  ;;  %v5642_v53 = vld [vmem:[#allocation7 + $0x180] ss:$16 sps:$4 sm:$0xff]   ;;  %v5650_v54 = vld [vmem:[#allocation7 + $0x1a4] ss:$16 sps:$4 sm:$0xff]   ;;  %v5645_v55 = vld [vmem:[#allocation7 + $0x188] ss:$16 sps:$4 sm:$0xff]  }
  0x9a   :  { %643 = vmatpush1.bf16.msra.mxu0 %v4880_v60  ;;  %674 = vmatprep.mubr.bf16.mxu0 %v6546_v0  ;;  %v5653_v56 = vld [vmem:[#allocation7 + $0x1ac] ss:$16 sps:$4 sm:$0xff]   ;;  %v5648_v57 = vld [vmem:[#allocation7 + $0x1a0] ss:$16 sps:$4 sm:$0xff]   ;;  %v5651_v58 = vld [vmem:[#allocation7 + $0x1a8] ss:$16 sps:$4 sm:$0xff]  }
  0x9b   :  { %4905 = vmatmul.mubr.msk.bf16.vlgmr.msra.gmra.mrb[8].mxu1 %vm392_vm0, %v6676_v25  ;;  %644 = vmatprep.subr.bf16.mxu0 %v4897_v62  ;;  %v5656_v59 = vld [vmem:[#allocation7 + $0x1c4] ss:$16 sps:$4 sm:$0xff]   ;;  %v5659_v60 = vld [vmem:[#allocation7 + $0x1cc] ss:$16 sps:$4 sm:$0xff]   ;;  %v5654_v61 = vld [vmem:[#allocation7 + $0x1c0] ss:$16 sps:$4 sm:$0xff]  }
  0x9c   :  { %684 = vmatpush1.bf16.msra.mxu1 %v4882_v63  ;;  %715 = vmatprep.mubr.bf16.mxu1 %v6546_v0  ;;  %v5584_v0 = vld [vmem:[#allocation7 + $0x44] ss:$16 sps:$4 sm:$0xff]   ;;  %v5657_v62 = vld [vmem:[#allocation7 + $0x1c8] ss:$16 sps:$4 sm:$0xff]  }
  0x9d   :  { %685 = vmatprep.subr.bf16.mxu1 %v4899_v1  ;;  %v5662_v63 = vld [vmem:[#allocation7 + $0x1e4] ss:$16 sps:$4 sm:$0xff]   ;;  %v5665_v1 = vld [vmem:[#allocation7 + $0x1ec] ss:$16 sps:$4 sm:$0xff]  }
  0x9e   :  { %645 = vmatpush1.bf16.msra.mxu0 %v4896_v2  ;;  %v5660_v2 = vld [vmem:[#allocation7 + $0x1e0] ss:$16 sps:$4 sm:$0xff]  }
  0x9f   :  { %3850 = vmatprep.subr.bf16.mxu0 %v5572_v3  ;;  %v5663_v3 = vld [vmem:[#allocation7 + $0x1e8] ss:$16 sps:$4 sm:$0xff]  }
  0xa0   :  { %686 = vmatpush1.bf16.msra.mxu1 %v4898_v4  ;;  %v5668_v4 = vld [vmem:[#allocation7 + $0x204] ss:$16 sps:$4 sm:$0xff]  }
  0xa1   :  { %4906 = vmatmul.mubr.msk.bf16.vlgmr.msra.gmra.mrb[12].mxu0 %vm392_vm0, %v6676_v25  ;;  %4178 = vmatprep.subr.bf16.mxu1 %v5575_v5  ;;  %v5671_v5 = vld [vmem:[#allocation7 + $0x20c] ss:$16 sps:$4 sm:$0xff]  }
  0xa2   :  { %3851 = vmatpush1.bf16.msra.mxu0 %v5570_v6  ;;  %v152_v6 = vlaneseq }
  0xa3   :  { %4907 = vmatmul.mubr.msk.bf16.vlgmr.msra.gmra.mrb[12].mxu1 %vm392_vm0, %v6676_v25  ;;  %3852 = vmatprep.subr.bf16.mxu0 %v5578_v7  ;;  %v5600_v25 = vld [vmem:[#allocation7 + $0xa0] ss:$16 sps:$4 sm:$0xff]  }
  0xa4   :  { %4179 = vmatpush1.bf16.msra.mxu1 %v5573_v8  ;;  %v6700_v7 = vshrl.u32 %v152_v6, 7 }
  0xa5   :  { %4180 = vmatprep.subr.bf16.mxu1 %v5581_v9  ;;  %v6705_v9 = vld [vmem:[#allocation6] sm:$0xff] }
  0xa6   :  { %3853 = vmatpush1.bf16.msra.mxu0 %v5576_v10  ;;  %v6703_v8 = vsub.s32 0, %v6700_v7  ;;  %v6708_v10 = vsub.s32 1, %v6700_v7 }
  0xa7   :  { %3854 = vmatprep.subr.bf16.mxu0 %v5584_v0  ;;  %v6711_v0 = vsub.s32 3, %v6700_v7 }
  0xa8   :  { %4181 = vmatpush1.bf16.msra.mxu1 %v5579_v11  ;;  %v155_v11 = vrot.slane %v6705_v9, %v6703_v8 }
  0xa9   :  { %4182 = vmatprep.subr.bf16.mxu1 %v5587_v12  ;;  %v159_v12 = vrot.slane %v6705_v9, %v6708_v10 }
  0xaa   :  { %3855 = vmatpush1.bf16.msra.mxu0 %v5582_v13 }
  0xab   :  { %3856 = vmatprep.subr.bf16.mxu0 %v5590_v14  ;;  %v167_v14 = vrot.slane %v6705_v9, %v6711_v0 }
  0xac   :  { %4183 = vmatpush1.bf16.msra.mxu1 %v5585_v15 }
  0xad   :  { %4184 = vmatprep.subr.bf16.mxu1 %v5593_v16 }
  0xae   :  { %3857 = vmatpush1.bf16.msra.mxu0 %v5588_v17 }
  0xaf   :  { %3858 = vmatprep.subr.bf16.mxu0 %v5596_v18 }
  0xb0   :  { %4185 = vmatpush1.bf16.msra.mxu1 %v5591_v19 }
  0xb1   :  { %4186 = vmatprep.subr.bf16.mxu1 %v5599_v21 }
  0xb2   :  { %3859 = vmatpush1.bf16.msra.mxu0 %v5594_v20 }
  0xb3   :  { %3860 = vmatprep.subr.bf16.mxu0 %v5602_v23 }
  0xb4   :  { %4187 = vmatpush1.bf16.msra.mxu1 %v5597_v22 }
  0xb5   :  { %4188 = vmatprep.subr.bf16.mxu1 %v5605_v24  ;;  %v5666_v24 = vld [vmem:[#allocation7 + $0x200] ss:$16 sps:$4 sm:$0xff]  }
  0xb6   :  { %3861 = vmatpush1.bf16.msra.mxu0 %v5600_v25  ;;  %v5669_v25 = vld [vmem:[#allocation7 + $0x208] ss:$16 sps:$4 sm:$0xff]  }
  0xb7   :  { %3862 = vmatprep.subr.bf16.mxu0 %v5608_v26 }
  0xb8   :  { %4189 = vmatpush1.bf16.msra.mxu1 %v5603_v27 }
  0xb9   :  { %4190 = vmatprep.subr.bf16.mxu1 %v5611_v28 }
  0xba   :  { %3863 = vmatpush1.bf16.msra.mxu0 %v5606_v29 }
  0xbb   :  { %3864 = vmatprep.subr.bf16.mxu0 %v5614_v30 }
  0xbc   :  { %4191 = vmatpush1.bf16.msra.mxu1 %v5609_v31 }
  0xbd   :  { %4192 = vmatprep.subr.bf16.mxu1 %v5617_v32  ;;  %v5674_v32 = vld [vmem:[#allocation7 + $0x224] ss:$16 sps:$4 sm:$0xff]  }
  0xbe   :  { %3865 = vmatpush1.bf16.msra.mxu0 %v5612_v33  ;;  %v5677_v33 = vld [vmem:[#allocation7 + $0x22c] ss:$16 sps:$4 sm:$0xff]  }
  0xbf   :  { %3866 = vmatprep.subr.bf16.mxu0 %v5620_v34  ;;  %v5672_v34 = vld [vmem:[#allocation7 + $0x220] ss:$16 sps:$4 sm:$0xff]  }
  0xc0   :  { %4193 = vmatpush1.bf16.msra.mxu1 %v5615_v35 }
  0xc1   :  { %4194 = vmatprep.subr.bf16.mxu1 %v5623_v36 }
  0xc2   :  { %3867 = vmatpush1.bf16.msra.mxu0 %v5618_v37 }
  0xc3   :  { %3868 = vmatprep.subr.bf16.mxu0 %v5626_v38  ;;  %v5675_v38 = vld [vmem:[#allocation7 + $0x228] ss:$16 sps:$4 sm:$0xff]  }
  0xc4   :  { %4195 = vmatpush1.bf16.msra.mxu1 %v5621_v39  ;;  %v5680_v39 = vld [vmem:[#allocation7 + $0x244] ss:$16 sps:$4 sm:$0xff]  }
  0xc5   :  { %4196 = vmatprep.subr.bf16.mxu1 %v5629_v40 }
  0xc6   :  { %3869 = vmatpush1.bf16.msra.mxu0 %v5624_v41 }
  0xc7   :  { %3870 = vmatprep.subr.bf16.mxu0 %v5632_v42  ;;  %v5683_v42 = vld [vmem:[#allocation7 + $0x24c] ss:$16 sps:$4 sm:$0xff]  }
  0xc8   :  { %4197 = vmatpush1.bf16.msra.mxu1 %v5627_v43 }
  0xc9   :  { %4198 = vmatprep.subr.bf16.mxu1 %v5635_v44 }
  0xca   :  { %3871 = vmatpush1.bf16.msra.mxu0 %v5630_v45 }
  0xcb   :  { %3872 = vmatprep.subr.bf16.mxu0 %v5638_v46 }
  0xcc   :  { %4199 = vmatpush1.bf16.msra.mxu1 %v5633_v47  ;;  %v5678_v47 = vld [vmem:[#allocation7 + $0x240] ss:$16 sps:$4 sm:$0xff]  }
  0xcd   :  { %4200 = vmatprep.subr.bf16.mxu1 %v5641_v48  ;;  %v5681_v48 = vld [vmem:[#allocation7 + $0x248] ss:$16 sps:$4 sm:$0xff]  }
  0xce   :  { %3873 = vmatpush1.bf16.msra.mxu0 %v5636_v49  ;;  %v5686_v49 = vld [vmem:[#allocation7 + $0x264] ss:$16 sps:$4 sm:$0xff]  }
  0xcf   :  { %3874 = vmatprep.subr.bf16.mxu0 %v5644_v50  ;;  %v5689_v50 = vld [vmem:[#allocation7 + $0x26c] ss:$16 sps:$4 sm:$0xff]  }
  0xd0   :  { %4201 = vmatpush1.bf16.msra.mxu1 %v5639_v51  ;;  %v5684_v51 = vld [vmem:[#allocation7 + $0x260] ss:$16 sps:$4 sm:$0xff]  }
  0xd1   :  { %4202 = vmatprep.subr.bf16.mxu1 %v5647_v52 }
  0xd2   :  { %3875 = vmatpush1.bf16.msra.mxu0 %v5642_v53  ;;  %v6732_v53 = vsub.s32 2, %v6700_v7 }
  0xd3   :  { %3876 = vmatprep.subr.bf16.mxu0 %v5650_v54  ;;  %v5687_v54 = vld [vmem:[#allocation7 + $0x268] ss:$16 sps:$4 sm:$0xff]  }
  0xd4   :  { %4203 = vmatpush1.bf16.msra.mxu1 %v5645_v55  ;;  %v6734_v55 = vld [vmem:[#allocation6 + $0x8] sm:$0xff] }
  0xd5   :  { %4204 = vmatprep.subr.bf16.mxu1 %v5653_v56 }
  0xd6   :  { %3877 = vmatpush1.bf16.msra.mxu0 %v5648_v57 }
  0xd7   :  { %3878 = vmatprep.subr.bf16.mxu0 %v5656_v59  ;;  %v5695_v59 = vld [vmem:[#allocation7 + $0x28c] ss:$16 sps:$4 sm:$0xff]  }
  0xd8   :  { %4205 = vmatpush1.bf16.msra.mxu1 %v5651_v58  ;;  %v5692_v58 = vld [vmem:[#allocation7 + $0x284] ss:$16 sps:$4 sm:$0xff]  }
  0xd9   :  { %4206 = vmatprep.subr.bf16.mxu1 %v5659_v60 }
  0xda   :  { %3879 = vmatpush1.bf16.msra.mxu0 %v5654_v61  ;;  %v195_v61 = vrot.slane %v6734_v55, %v6732_v53 }
  0xdb   :  { %3880 = vmatprep.subr.bf16.mxu0 %v5662_v63 }
  0xdc   :  { %4207 = vmatpush1.bf16.msra.mxu1 %v5657_v62  ;;  %v199_v62 = vrot.slane %v6734_v55, %v6711_v0 }
  0xdd   :  { %4208 = vmatprep.subr.bf16.mxu1 %v5665_v1 }
  0xde   :  { %3881 = vmatpush1.bf16.msra.mxu0 %v5660_v2 }
  0xdf   :  { %3891 = vmatprep.subr.bf16.mxu0 %v5668_v4 }
  0xe0   :  { %4209 = vmatpush1.bf16.msra.mxu1 %v5663_v3  ;;  %v170_v3 = vsub.s32 4, %v6700_v7 }
  0xe1   :  { %4219 = vmatprep.subr.bf16.mxu1 %v5671_v5 }
 0x15c   :  { %v430_v13 = vpop.f32.mrb[0].mxu0  ;;  %v6719_v19 = vpop.f32.mrb[0].mxu1 }
 0x15d   :  { %v431_v15 = vadd.f32 %v430_v13, %v155_v11  ;;  %v432_v16 = vpop.f32.mrb[1].mxu0  ;;  %v473_v22 = vpop.f32.mrb[1].mxu1  ;;  %v5690_v11 = vld [vmem:[#allocation7 + $0x280] ss:$16 sps:$4 sm:$0xff]   ;;  %v5698_v13 = vld [vmem:[#allocation7 + $0x2a4] ss:$16 sps:$4 sm:$0xff]  }
 0x15e   :  { %v433_v17 = vadd.f32 %v432_v16, %v159_v12  ;;  %v434_v18 = vpop.f32.mrb[2].mxu0  ;;  %v474_v26 = vadd.f32 %v473_v22, %v167_v14  ;;  %v475_v27 = vpop.f32.mrb[2].mxu1  ;;  %v5693_v12 = vld [vmem:[#allocation7 + $0x288] ss:$16 sps:$4 sm:$0xff]   ;;  %v5701_v14 = vld [vmem:[#allocation7 + $0x2ac] ss:$16 sps:$4 sm:$0xff]  }
 0x15f   :  { %v724_v20 = vmax.f32 %v431_v15, 0.0  ;;  %v435_v21 = vpop.f32.mrb[3].mxu0  ;;  %v476_v28 = vpop.f32.mrb[3].mxu1  ;;  %v203_v15 = vrot.slane %v6734_v55, %v170_v3  ;;  %v5696_v16 = vld [vmem:[#allocation7 + $0x2a0] ss:$16 sps:$4 sm:$0xff]   ;;  %v178_v18 = vsub.s32 6, %v6700_v7 }
 0x160   :  { %v725_v23 = vmax.f32 %v433_v17, 0.0  ;;  %v727_v30 = vmax.f32 %v474_v26, 0.0  ;;  %v174_v17 = vsub.s32 5, %v6700_v7 }
 0x161   :  { %v740_v31 = vpack.c.bf16 %v724_v20, %v724_v20  ;;  %v182_v20 = vsub.s32 7, %v6700_v7  ;;  %v211_v27 = vrot.slane %v6734_v55, %v178_v18 }
 0x162   :  { %v741_v29 = vpack.c.bf16 %v725_v23, %v725_v23  ;;  %v743_v35 = vpack.c.bf16 %v727_v30, %v727_v30  ;;  %v5699_v23 = vld [vmem:[#allocation7 + $0x2a8] ss:$16 sps:$4 sm:$0xff]   ;;  %v5707_v30 = vld [vmem:[#allocation7 + $0x2cc] ss:$16 sps:$4 sm:$0xff]  }
 0x164   :  { %3882 = vmatprep.mubr.bf16.mxu0 %v741_v29  ;;  %4210 = vmatprep.mubr.bf16.mxu1 %v741_v29  ;;  %v6721_v36 = vpop.f32.mrb[4].mxu0  ;;  %v215_v29 = vrot.slane %v6734_v55, %v182_v20 }
 0x165   :  { %3883 = vmatmul.mubr.bf16.vlgmr.msra.gmra.mrb[16].mxu0 %v740_v31  ;;  %4211 = vmatmul.mubr.bf16.vlgmr.msra.gmra.mrb[16].mxu1 %v740_v31  ;;  %v6723_v37 = vpop.f32.mrb[5].mxu0 }
 0x166   :  { %3892 = vmatpush1.bf16.msra.mxu0 %v5666_v24  ;;  %4220 = vmatpush1.bf16.msra.mxu1 %v5669_v25  ;;  %v516_v40 = vpop.f32.mrb[6].mxu0  ;;  %v6725_v41 = vpop.f32.mrb[4].mxu1  ;;  %v5704_v24 = vld [vmem:[#allocation7 + $0x2c4] ss:$16 sps:$4 sm:$0xff]   ;;  %v207_v25 = vrot.slane %v6734_v55, %v174_v17 }
 0x167   :  { %3893 = vmatprep.subr.bf16.mxu0 %v5674_v32  ;;  %4221 = vmatprep.subr.bf16.mxu1 %v5677_v33  ;;  %v517_v43 = vpop.f32.mrb[7].mxu0  ;;  %v6727_v44 = vpop.f32.mrb[5].mxu1 }
 0x168   :  { %3923 = vmatprep.mubr.bf16.mxu0 %v743_v35  ;;  %4251 = vmatprep.mubr.bf16.mxu1 %v743_v35  ;;  %v557_v45 = vpop.f32.mrb[6].mxu1  ;;  %v5705_v43 = vld [vmem:[#allocation7 + $0x2c8] ss:$16 sps:$4 sm:$0xff]  }
 0x169   :  { %v558_v46 = vpop.f32.mrb[7].mxu1  ;;  %v5710_v45 = vld [vmem:[#allocation7 + $0x2e4] ss:$16 sps:$4 sm:$0xff]  }
 0x16a   :  { %3894 = vmatpush1.bf16.msra.mxu0 %v5672_v34  ;;  %4222 = vmatpush1.bf16.msra.mxu1 %v5675_v38  ;;  %v5713_v46 = vld [vmem:[#allocation7 + $0x2ec] ss:$16 sps:$4 sm:$0xff]  }
 0x16b   :  { %3895 = vmatprep.subr.bf16.mxu0 %v5680_v39  ;;  %4223 = vmatprep.subr.bf16.mxu1 %v5683_v42  ;;  %v5702_v42 = vld [vmem:[#allocation7 + $0x2c0] ss:$16 sps:$4 sm:$0xff]  }
 0x16c   :  { %v6729_v52 = vpop.f32.mrb[8].mxu0 }
 0x16d   :  { %v6736_v56 = vpop.f32.mrb[9].mxu0 }
 0x16e   :  { %3896 = vmatpush1.bf16.msra.mxu0 %v5678_v47  ;;  %4224 = vmatpush1.bf16.msra.mxu1 %v5681_v48  ;;  %v635_v57 = vpop.f32.mrb[8].mxu1  ;;  %v598_v60 = vpop.f32.mrb[10].mxu0  ;;  %v5708_v47 = vld [vmem:[#allocation7 + $0x2e0] ss:$16 sps:$4 sm:$0xff]   ;;  %v5711_v48 = vld [vmem:[#allocation7 + $0x2e8] ss:$16 sps:$4 sm:$0xff]  }
 0x16f   :  { %3897 = vmatprep.subr.bf16.mxu0 %v5686_v49  ;;  %4225 = vmatprep.subr.bf16.mxu1 %v5689_v50  ;;  %v637_v63 = vpop.f32.mrb[9].mxu1  ;;  %v599_v1 = vpop.f32.mrb[11].mxu0  ;;  %v6743_v4 = vadd.f32 %v635_v57, %v195_v61  ;;  %v5716_v49 = vld [vmem:[#allocation7 + $0x304] ss:$16 sps:$4 sm:$0xff]   ;;  %v5719_v50 = vld [vmem:[#allocation7 + $0x30c] ss:$16 sps:$4 sm:$0xff]  }
 0x170   :  { %v639_v2 = vpop.f32.mrb[10].mxu1  ;;  %v6745_v5 = vadd.f32 %v637_v63, %v199_v62  ;;  %v5722_v57 = vld [vmem:[#allocation7 + $0x324] ss:$16 sps:$4 sm:$0xff]   ;;  %v5723_v60 = vld [vmem:[#allocation7 + $0x328] ss:$16 sps:$4 sm:$0xff]  }
 0x171   :  { %v640_v6 = vpop.f32.mrb[11].mxu1  ;;  %v5728_v61 = vld [vmem:[#allocation7 + $0x344] ss:$16 sps:$4 sm:$0xff]   ;;  %v5731_v62 = vld [vmem:[#allocation7 + $0x34c] ss:$16 sps:$4 sm:$0xff]  }
 0x172   :  { %3898 = vmatpush1.bf16.msra.mxu0 %v5684_v51  ;;  %4226 = vmatpush1.bf16.msra.mxu1 %v5687_v54  ;;  %v5714_v51 = vld [vmem:[#allocation7 + $0x300] ss:$16 sps:$4 sm:$0xff]   ;;  %v5717_v54 = vld [vmem:[#allocation7 + $0x308] ss:$16 sps:$4 sm:$0xff]   ;;  %v5734_v2 = vld [vmem:[#allocation7 + $0x364] ss:$16 sps:$4 sm:$0xff]  }
 0x173   :  { %3899 = vmatprep.subr.bf16.mxu0 %v5692_v58  ;;  %4227 = vmatprep.subr.bf16.mxu1 %v5695_v59  ;;  %v5725_v58 = vld [vmem:[#allocation7 + $0x32c] ss:$16 sps:$4 sm:$0xff]   ;;  %v5720_v59 = vld [vmem:[#allocation7 + $0x320] ss:$16 sps:$4 sm:$0xff]   ;;  %v5729_v1 = vld [vmem:[#allocation7 + $0x348] ss:$16 sps:$4 sm:$0xff]  }
 0x174   :  { %v676_v21 = vpop.f32.mrb[12].mxu0  ;;  %v5726_v63 = vld [vmem:[#allocation7 + $0x340] ss:$16 sps:$4 sm:$0xff]   ;;  %v5737_v6 = vld [vmem:[#allocation7 + $0x36c] ss:$16 sps:$4 sm:$0xff]  }
 0x175   :  { %v6753_v22 = vadd.f32 %v676_v21, %v203_v15  ;;  %v678_v26 = vpop.f32.mrb[13].mxu0  ;;  %v5738_v15 = vld [vmem:[#allocation7 + $0x380] ss:$16 sps:$4 sm:$0xff]   ;;  %v5746_v21 = vld [vmem:[#allocation7 + $0x3a4] ss:$16 sps:$4 sm:$0xff]  }
 0x176   :  { %3900 = vmatpush1.bf16.msra.mxu0 %v5690_v11  ;;  %4228 = vmatpush1.bf16.msra.mxu1 %v5693_v12  ;;  %v717_v28 = vpop.f32.mrb[12].mxu1  ;;  %v680_v31 = vpop.f32.mrb[14].mxu0  ;;  %v6764_v33 = vadd.f32 %v678_v26, %v207_v25  ;;  %v5732_v11 = vld [vmem:[#allocation7 + $0x360] ss:$16 sps:$4 sm:$0xff]   ;;  %v5735_v12 = vld [vmem:[#allocation7 + $0x368] ss:$16 sps:$4 sm:$0xff]  }
 0x177   :  { %3901 = vmatprep.subr.bf16.mxu0 %v5698_v13  ;;  %4229 = vmatprep.subr.bf16.mxu1 %v5701_v14  ;;  %v719_v32 = vpop.f32.mrb[13].mxu1  ;;  %v6766_v34 = vadd.f32 %v717_v28, %v211_v27  ;;  %v681_v35 = vpop.f32.mrb[15].mxu0  ;;  %v5740_v13 = vld [vmem:[#allocation7 + $0x384] ss:$16 sps:$4 sm:$0xff]   ;;  %v5743_v14 = vld [vmem:[#allocation7 + $0x38c] ss:$16 sps:$4 sm:$0xff]  }
 0x178   :  { %v6768_v38 = vadd.f32 %v719_v32, %v215_v29  ;;  %v721_v39 = vpop.f32.mrb[14].mxu1  ;;  %v5744_v25 = vld [vmem:[#allocation7 + $0x3a0] ss:$16 sps:$4 sm:$0xff]   ;;  %v5747_v26 = vld [vmem:[#allocation7 + $0x3a8] ss:$16 sps:$4 sm:$0xff]  }
 0x179   :  { %v722_v40 = vpop.f32.mrb[15].mxu1  ;;  %v5752_v28 = vld [vmem:[#allocation7 + $0x3c4] ss:$16 sps:$4 sm:$0xff]   ;;  %v5755_v29 = vld [vmem:[#allocation7 + $0x3cc] ss:$16 sps:$4 sm:$0xff]  }
 0x17a   :  { %3902 = vmatpush1.bf16.msra.mxu0 %v5696_v16  ;;  %4230 = vmatpush1.bf16.msra.mxu1 %v5699_v23  ;;  %v5741_v16 = vld [vmem:[#allocation7 + $0x388] ss:$16 sps:$4 sm:$0xff]   ;;  %v5749_v23 = vld [vmem:[#allocation7 + $0x3ac] ss:$16 sps:$4 sm:$0xff]   ;;  %v5750_v31 = vld [vmem:[#allocation7 + $0x3c0] ss:$16 sps:$4 sm:$0xff]  }
 0x17b   :  { %3903 = vmatprep.subr.bf16.mxu0 %v5704_v24  ;;  %4231 = vmatprep.subr.bf16.mxu1 %v5707_v30  ;;  %v163_v24 = vrot.slane %v6705_v9, %v6732_v53  ;;  %v175_v30 = vrot.slane %v6705_v9, %v174_v17  ;;  %v5753_v32 = vld [vmem:[#allocation7 + $0x3c8] ss:$16 sps:$4 sm:$0xff]   ;;  %v5758_v35 = vld [vmem:[#allocation7 + $0x3e4] ss:$16 sps:$4 sm:$0xff]   ;;  %v5761_v40 = vld [vmem:[#allocation7 + $0x3ec] ss:$16 sps:$4 sm:$0xff]  }
 0x17d   :  { %v472_v27 = vadd.f32 %v6719_v19, %v163_v24  ;;  %v5759_v19 = vld [vmem:[#allocation7 + $0x3e8] ss:$16 sps:$4 sm:$0xff]   ;;  %v5803_v24 = vld [vmem:[#allocation7 + $0x4cc] ss:$16 sps:$4 sm:$0xff]  }
 0x17e   :  { %3904 = vmatpush1.bf16.msra.mxu0 %v5702_v42  ;;  %4232 = vmatpush1.bf16.msra.mxu1 %v5705_v43  ;;  %v515_v42 = vadd.f32 %v6723_v37, %v175_v30  ;;  %v5756_v43 = vld [vmem:[#allocation7 + $0x3e0] ss:$16 sps:$4 sm:$0xff]   ;;  %v5807_v30 = vld [vmem:[#allocation7 + $0x4e8] ss:$16 sps:$4 sm:$0xff]  }
 0x17f   :  { %3905 = vmatprep.subr.bf16.mxu0 %v5710_v45  ;;  %4233 = vmatprep.subr.bf16.mxu1 %v5713_v46  ;;  %v726_v39 = vmax.f32 %v472_v27, 0.0  ;;  %v5764_v45 = vld [vmem:[#allocation7 + $0x404] ss:$16 sps:$4 sm:$0xff]   ;;  %v5767_v46 = vld [vmem:[#allocation7 + $0x40c] ss:$16 sps:$4 sm:$0xff]  }
 0x180   :  { %v729_v17 = vmax.f32 %v515_v42, 0.0  ;;  %v5768_v37 = vld [vmem:[#allocation7 + $0x420] ss:$16 sps:$4 sm:$0xff]   ;;  %v5806_v27 = vld [vmem:[#allocation7 + $0x4e4] ss:$16 sps:$4 sm:$0xff]  }
 0x181   :  { %v5821_v42 = vld [vmem:[#allocation7 + $0x52c] ss:$16 sps:$4 sm:$0xff]  }
 0x182   :  { %3906 = vmatpush1.bf16.msra.mxu0 %v5708_v47  ;;  %4234 = vmatpush1.bf16.msra.mxu1 %v5711_v48  ;;  %v5762_v47 = vld [vmem:[#allocation7 + $0x400] ss:$16 sps:$4 sm:$0xff]   ;;  %v5765_v48 = vld [vmem:[#allocation7 + $0x408] ss:$16 sps:$4 sm:$0xff]  }
 0x183   :  { %3907 = vmatprep.subr.bf16.mxu0 %v5716_v49  ;;  %4235 = vmatprep.subr.bf16.mxu1 %v5719_v50  ;;  %v742_v49 = vpack.c.bf16 %v726_v39, %v726_v39  ;;  %v5770_v50 = vld [vmem:[#allocation7 + $0x424] ss:$16 sps:$4 sm:$0xff]   ;;  %v5813_v39 = vld [vmem:[#allocation7 + $0x508] ss:$16 sps:$4 sm:$0xff]  }
 0x186   :  { %3908 = vmatpush1.bf16.msra.mxu0 %v5714_v51  ;;  %4236 = vmatpush1.bf16.msra.mxu1 %v5717_v54  ;;  %v5773_v51 = vld [vmem:[#allocation7 + $0x42c] ss:$16 sps:$4 sm:$0xff]   ;;  %v745_v54 = vpack.c.bf16 %v729_v17, %v729_v17  ;;  %v5822_v17 = vld [vmem:[#allocation7 + $0x540] ss:$16 sps:$4 sm:$0xff]  }
 0x187   :  { %3909 = vmatprep.subr.bf16.mxu0 %v5722_v57  ;;  %4237 = vmatprep.subr.bf16.mxu1 %v5725_v58  ;;  %v5771_v57 = vld [vmem:[#allocation7 + $0x428] ss:$16 sps:$4 sm:$0xff]   ;;  %v5776_v58 = vld [vmem:[#allocation7 + $0x444] ss:$16 sps:$4 sm:$0xff]  }
 0x18a   :  { %3910 = vmatpush1.bf16.msra.mxu0 %v5720_v59  ;;  %4238 = vmatpush1.bf16.msra.mxu1 %v5723_v60  ;;  %v5779_v59 = vld [vmem:[#allocation7 + $0x44c] ss:$16 sps:$4 sm:$0xff]   ;;  %v5774_v60 = vld [vmem:[#allocation7 + $0x440] ss:$16 sps:$4 sm:$0xff]  }
 0x18b   :  { %3911 = vmatprep.subr.bf16.mxu0 %v5728_v61  ;;  %4239 = vmatprep.subr.bf16.mxu1 %v5731_v62  ;;  %v5777_v61 = vld [vmem:[#allocation7 + $0x448] ss:$16 sps:$4 sm:$0xff]   ;;  %v5782_v62 = vld [vmem:[#allocation7 + $0x464] ss:$16 sps:$4 sm:$0xff]  }
 0x18e   :  { %3912 = vmatpush1.bf16.msra.mxu0 %v5726_v63  ;;  %4240 = vmatpush1.bf16.msra.mxu1 %v5729_v1  ;;  %v5785_v63 = vld [vmem:[#allocation7 + $0x46c] ss:$16 sps:$4 sm:$0xff]   ;;  %v5780_v1 = vld [vmem:[#allocation7 + $0x460] ss:$16 sps:$4 sm:$0xff]  }
 0x18f   :  { %3913 = vmatprep.subr.bf16.mxu0 %v5734_v2  ;;  %4241 = vmatprep.subr.bf16.mxu1 %v5737_v6  ;;  %v5783_v2 = vld [vmem:[#allocation7 + $0x468] ss:$16 sps:$4 sm:$0xff]   ;;  %v5788_v6 = vld [vmem:[#allocation7 + $0x484] ss:$16 sps:$4 sm:$0xff]  }
 0x192   :  { %3914 = vmatpush1.bf16.msra.mxu0 %v5732_v11  ;;  %4242 = vmatpush1.bf16.msra.mxu1 %v5735_v12  ;;  %v5791_v11 = vld [vmem:[#allocation7 + $0x48c] ss:$16 sps:$4 sm:$0xff]   ;;  %v5786_v12 = vld [vmem:[#allocation7 + $0x480] ss:$16 sps:$4 sm:$0xff]  }
 0x193   :  { %3915 = vmatprep.subr.bf16.mxu0 %v5740_v13  ;;  %4243 = vmatprep.subr.bf16.mxu1 %v5743_v14  ;;  %v5789_v13 = vld [vmem:[#allocation7 + $0x488] ss:$16 sps:$4 sm:$0xff]   ;;  %v5794_v14 = vld [vmem:[#allocation7 + $0x4a4] ss:$16 sps:$4 sm:$0xff]  }
 0x196   :  { %3916 = vmatpush1.bf16.msra.mxu0 %v5738_v15  ;;  %4244 = vmatpush1.bf16.msra.mxu1 %v5741_v16  ;;  %v5797_v15 = vld [vmem:[#allocation7 + $0x4ac] ss:$16 sps:$4 sm:$0xff]   ;;  %v5792_v16 = vld [vmem:[#allocation7 + $0x4a0] ss:$16 sps:$4 sm:$0xff]  }
 0x197   :  { %3917 = vmatprep.subr.bf16.mxu0 %v5746_v21  ;;  %4245 = vmatprep.subr.bf16.mxu1 %v5749_v23  ;;  %v5795_v21 = vld [vmem:[#allocation7 + $0x4a8] ss:$16 sps:$4 sm:$0xff]   ;;  %v5800_v23 = vld [vmem:[#allocation7 + $0x4c4] ss:$16 sps:$4 sm:$0xff]  }
 0x19a   :  { %3918 = vmatpush1.bf16.msra.mxu0 %v5744_v25  ;;  %4246 = vmatpush1.bf16.msra.mxu1 %v5747_v26  ;;  %v5798_v25 = vld [vmem:[#allocation7 + $0x4c0] ss:$16 sps:$4 sm:$0xff]   ;;  %v5801_v26 = vld [vmem:[#allocation7 + $0x4c8] ss:$16 sps:$4 sm:$0xff]  }
 0x19b   :  { %3919 = vmatprep.subr.bf16.mxu0 %v5752_v28  ;;  %4247 = vmatprep.subr.bf16.mxu1 %v5755_v29  ;;  %v5809_v28 = vld [vmem:[#allocation7 + $0x4ec] ss:$16 sps:$4 sm:$0xff]   ;;  %v5804_v29 = vld [vmem:[#allocation7 + $0x4e0] ss:$16 sps:$4 sm:$0xff]  }
 0x19e   :  { %3920 = vmatpush1.bf16.msra.mxu0 %v5750_v31  ;;  %4248 = vmatpush1.bf16.msra.mxu1 %v5753_v32  ;;  %v5812_v31 = vld [vmem:[#allocation7 + $0x504] ss:$16 sps:$4 sm:$0xff]   ;;  %v5815_v32 = vld [vmem:[#allocation7 + $0x50c] ss:$16 sps:$4 sm:$0xff]  }
 0x19f   :  { %3921 = vmatprep.subr.bf16.mxu0 %v5758_v35  ;;  %4249 = vmatprep.subr.bf16.mxu1 %v5761_v40  ;;  %v5810_v35 = vld [vmem:[#allocation7 + $0x500] ss:$16 sps:$4 sm:$0xff]   ;;  %v5818_v40 = vld [vmem:[#allocation7 + $0x524] ss:$16 sps:$4 sm:$0xff]  }
 0x1a2   :  { %3922 = vmatpush1.bf16.msra.mxu0 %v5756_v43  ;;  %4250 = vmatpush1.bf16.msra.mxu1 %v5759_v19  ;;  %v5816_v43 = vld [vmem:[#allocation7 + $0x520] ss:$16 sps:$4 sm:$0xff]   ;;  %v5819_v19 = vld [vmem:[#allocation7 + $0x528] ss:$16 sps:$4 sm:$0xff]  }
 0x1a3   :  { %3932 = vmatprep.subr.bf16.mxu0 %v5764_v45  ;;  %4260 = vmatprep.subr.bf16.mxu1 %v5767_v46  ;;  %v5824_v45 = vld [vmem:[#allocation7 + $0x544] ss:$16 sps:$4 sm:$0xff]   ;;  %v5827_v46 = vld [vmem:[#allocation7 + $0x54c] ss:$16 sps:$4 sm:$0xff]  }
 0x1a5   :  { %3924 = vmatmul.mubr.bf16.vlgmr.msra.gmra.mrb[16].mxu0 %v742_v49  ;;  %4252 = vmatmul.mubr.bf16.vlgmr.msra.gmra.mrb[16].mxu1 %v742_v49  ;;  %v5833_v49 = vld [vmem:[#allocation7 + $0x56c] ss:$16 sps:$4 sm:$0xff]  }
 0x1a6   :  { %3933 = vmatpush1.bf16.msra.mxu0 %v5762_v47  ;;  %4261 = vmatpush1.bf16.msra.mxu1 %v5765_v48  ;;  %v5825_v47 = vld [vmem:[#allocation7 + $0x548] ss:$16 sps:$4 sm:$0xff]   ;;  %v5830_v48 = vld [vmem:[#allocation7 + $0x564] ss:$16 sps:$4 sm:$0xff]  }
 0x1a7   :  { %3934 = vmatprep.subr.bf16.mxu0 %v5770_v50  ;;  %4262 = vmatprep.subr.bf16.mxu1 %v5773_v51  ;;  %v5828_v50 = vld [vmem:[#allocation7 + $0x560] ss:$16 sps:$4 sm:$0xff]   ;;  %v5831_v51 = vld [vmem:[#allocation7 + $0x568] ss:$16 sps:$4 sm:$0xff]  }
 0x1a8   :  { %3964 = vmatprep.mubr.bf16.mxu0 %v745_v54  ;;  %4292 = vmatprep.mubr.bf16.mxu1 %v745_v54  ;;  %v5836_v54 = vld [vmem:[#allocation7 + $0x584] ss:$16 sps:$4 sm:$0xff]  }
 0x1aa   :  { %3935 = vmatpush1.bf16.msra.mxu0 %v5768_v37  ;;  %4263 = vmatpush1.bf16.msra.mxu1 %v5771_v57  ;;  %v5839_v37 = vld [vmem:[#allocation7 + $0x58c] ss:$16 sps:$4 sm:$0xff]   ;;  %v5834_v57 = vld [vmem:[#allocation7 + $0x580] ss:$16 sps:$4 sm:$0xff]  }
 0x1ab   :  { %3936 = vmatprep.subr.bf16.mxu0 %v5776_v58  ;;  %4264 = vmatprep.subr.bf16.mxu1 %v5779_v59  ;;  %v5837_v58 = vld [vmem:[#allocation7 + $0x588] ss:$16 sps:$4 sm:$0xff]   ;;  %v5842_v59 = vld [vmem:[#allocation7 + $0x5a4] ss:$16 sps:$4 sm:$0xff]  }
 0x1ae   :  { %3937 = vmatpush1.bf16.msra.mxu0 %v5774_v60  ;;  %4265 = vmatpush1.bf16.msra.mxu1 %v5777_v61  ;;  %v5845_v60 = vld [vmem:[#allocation7 + $0x5ac] ss:$16 sps:$4 sm:$0xff]   ;;  %v171_v61 = vrot.slane %v6705_v9, %v170_v3  ;;  %v5854_v3 = vld [vmem:[#allocation7 + $0x5e4] ss:$16 sps:$4 sm:$0xff]  }
 0x1af   :  { %3938 = vmatprep.subr.bf16.mxu0 %v5782_v62  ;;  %4266 = vmatprep.subr.bf16.mxu1 %v5785_v63  ;;  %v5840_v62 = vld [vmem:[#allocation7 + $0x5a0] ss:$16 sps:$4 sm:$0xff]   ;;  %v5843_v63 = vld [vmem:[#allocation7 + $0x5a8] ss:$16 sps:$4 sm:$0xff]  }
 0x1b2   :  { %3939 = vmatpush1.bf16.msra.mxu0 %v5780_v1  ;;  %4267 = vmatpush1.bf16.msra.mxu1 %v5783_v2  ;;  %v5848_v1 = vld [vmem:[#allocation7 + $0x5c4] ss:$16 sps:$4 sm:$0xff]   ;;  %v5851_v2 = vld [vmem:[#allocation7 + $0x5cc] ss:$16 sps:$4 sm:$0xff]  }
 0x1b3   :  { %3940 = vmatprep.subr.bf16.mxu0 %v5788_v6  ;;  %4268 = vmatprep.subr.bf16.mxu1 %v5791_v11  ;;  %v183_v6 = vrot.slane %v6705_v9, %v182_v20  ;;  %v513_v11 = vadd.f32 %v6721_v36, %v171_v61  ;;  %v5860_v9 = vld [vmem:[#allocation7 + $0x604] ss:$16 sps:$4 sm:$0xff]   ;;  %v5863_v20 = vld [vmem:[#allocation7 + $0x60c] ss:$16 sps:$4 sm:$0xff]   ;;  %v5900_v61 = vld [vmem:[#allocation7 + $0x6e0] ss:$16 sps:$4 sm:$0xff]  }
 0x1b6   :  { %3941 = vmatpush1.bf16.msra.mxu0 %v5786_v12  ;;  %4269 = vmatpush1.bf16.msra.mxu1 %v5789_v13  ;;  %v5846_v12 = vld [vmem:[#allocation7 + $0x5c0] ss:$16 sps:$4 sm:$0xff]   ;;  %v5849_v13 = vld [vmem:[#allocation7 + $0x5c8] ss:$16 sps:$4 sm:$0xff]  }
 0x1b7   :  { %3942 = vmatprep.subr.bf16.mxu0 %v5794_v14  ;;  %4270 = vmatprep.subr.bf16.mxu1 %v5797_v15  ;;  %v5857_v14 = vld [vmem:[#allocation7 + $0x5ec] ss:$16 sps:$4 sm:$0xff]   ;;  %v556_v15 = vadd.f32 %v6727_v44, %v183_v6  ;;  %v5909_v6 = vld [vmem:[#allocation7 + $0x708] ss:$16 sps:$4 sm:$0xff]  }
 0x1b9   :  { %v731_v36 = vmax.f32 %v556_v15, 0.0  ;;  %v5923_v15 = vld [vmem:[#allocation7 + $0x74c] ss:$16 sps:$4 sm:$0xff]  }
 0x1ba   :  { %3943 = vmatpush1.bf16.msra.mxu0 %v5792_v16  ;;  %4271 = vmatpush1.bf16.msra.mxu1 %v5795_v21  ;;  %v728_v16 = vmax.f32 %v513_v11, 0.0  ;;  %v5852_v21 = vld [vmem:[#allocation7 + $0x5e0] ss:$16 sps:$4 sm:$0xff]   ;;  %v5914_v11 = vld [vmem:[#allocation7 + $0x724] ss:$16 sps:$4 sm:$0xff]  }
 0x1bb   :  { %3944 = vmatprep.subr.bf16.mxu0 %v5800_v23  ;;  %4272 = vmatprep.subr.bf16.mxu1 %v5803_v24  ;;  %v5855_v23 = vld [vmem:[#allocation7 + $0x5e8] ss:$16 sps:$4 sm:$0xff]   ;;  %v747_v44 = vpack.c.bf16 %v731_v36, %v731_v36 }
 0x1bc   :  { %v744_v24 = vpack.c.bf16 %v728_v16, %v728_v16  ;;  %v5918_v16 = vld [vmem:[#allocation7 + $0x740] ss:$16 sps:$4 sm:$0xff]   ;;  %v5927_v36 = vld [vmem:[#allocation7 + $0x768] ss:$16 sps:$4 sm:$0xff]  }
 0x1be   :  { %3945 = vmatpush1.bf16.msra.mxu0 %v5798_v25  ;;  %4273 = vmatpush1.bf16.msra.mxu1 %v5801_v26  ;;  %v5858_v25 = vld [vmem:[#allocation7 + $0x600] ss:$16 sps:$4 sm:$0xff]   ;;  %v5861_v26 = vld [vmem:[#allocation7 + $0x608] ss:$16 sps:$4 sm:$0xff]  }
 0x1bf   :  { %3946 = vmatprep.subr.bf16.mxu0 %v5806_v27  ;;  %4274 = vmatprep.subr.bf16.mxu1 %v5809_v28  ;;  %v5866_v27 = vld [vmem:[#allocation7 + $0x624] ss:$16 sps:$4 sm:$0xff]   ;;  %v5869_v28 = vld [vmem:[#allocation7 + $0x62c] ss:$16 sps:$4 sm:$0xff]  }
 0x1c2   :  { %3947 = vmatpush1.bf16.msra.mxu0 %v5804_v29  ;;  %4275 = vmatpush1.bf16.msra.mxu1 %v5807_v30  ;;  %v5864_v29 = vld [vmem:[#allocation7 + $0x620] ss:$16 sps:$4 sm:$0xff]   ;;  %v5867_v30 = vld [vmem:[#allocation7 + $0x628] ss:$16 sps:$4 sm:$0xff]  }
 0x1c3   :  { %3948 = vmatprep.subr.bf16.mxu0 %v5812_v31  ;;  %4276 = vmatprep.subr.bf16.mxu1 %v5815_v32  ;;  %v5872_v31 = vld [vmem:[#allocation7 + $0x644] ss:$16 sps:$4 sm:$0xff]   ;;  %v5875_v32 = vld [vmem:[#allocation7 + $0x64c] ss:$16 sps:$4 sm:$0xff]  }
 0x1c6   :  { %3949 = vmatpush1.bf16.msra.mxu0 %v5810_v35  ;;  %4277 = vmatpush1.bf16.msra.mxu1 %v5813_v39  ;;  %v5870_v35 = vld [vmem:[#allocation7 + $0x640] ss:$16 sps:$4 sm:$0xff]   ;;  %v5873_v39 = vld [vmem:[#allocation7 + $0x648] ss:$16 sps:$4 sm:$0xff]  }
 0x1c7   :  { %3950 = vmatprep.subr.bf16.mxu0 %v5818_v40  ;;  %4278 = vmatprep.subr.bf16.mxu1 %v5821_v42  ;;  %v5878_v40 = vld [vmem:[#allocation7 + $0x664] ss:$16 sps:$4 sm:$0xff]   ;;  %v5881_v42 = vld [vmem:[#allocation7 + $0x66c] ss:$16 sps:$4 sm:$0xff]  }
 0x1ca   :  { %3951 = vmatpush1.bf16.msra.mxu0 %v5816_v43  ;;  %4279 = vmatpush1.bf16.msra.mxu1 %v5819_v19  ;;  %v5876_v43 = vld [vmem:[#allocation7 + $0x660] ss:$16 sps:$4 sm:$0xff]   ;;  %v5879_v19 = vld [vmem:[#allocation7 + $0x668] ss:$16 sps:$4 sm:$0xff]  }
 0x1cb   :  { %3952 = vmatprep.subr.bf16.mxu0 %v5824_v45  ;;  %4280 = vmatprep.subr.bf16.mxu1 %v5827_v46  ;;  %v5884_v45 = vld [vmem:[#allocation7 + $0x684] ss:$16 sps:$4 sm:$0xff]   ;;  %v5887_v46 = vld [vmem:[#allocation7 + $0x68c] ss:$16 sps:$4 sm:$0xff]  }
 0x1ce   :  { %3953 = vmatpush1.bf16.msra.mxu0 %v5822_v17  ;;  %4281 = vmatpush1.bf16.msra.mxu1 %v5825_v47  ;;  %v5882_v17 = vld [vmem:[#allocation7 + $0x680] ss:$16 sps:$4 sm:$0xff]   ;;  %v5885_v47 = vld [vmem:[#allocation7 + $0x688] ss:$16 sps:$4 sm:$0xff]  }
 0x1cf   :  { %3954 = vmatprep.subr.bf16.mxu0 %v5830_v48  ;;  %4282 = vmatprep.subr.bf16.mxu1 %v5833_v49  ;;  %v5890_v48 = vld [vmem:[#allocation7 + $0x6a4] ss:$16 sps:$4 sm:$0xff]   ;;  %v5893_v49 = vld [vmem:[#allocation7 + $0x6ac] ss:$16 sps:$4 sm:$0xff]  }
 0x1d2   :  { %3955 = vmatpush1.bf16.msra.mxu0 %v5828_v50  ;;  %4283 = vmatpush1.bf16.msra.mxu1 %v5831_v51  ;;  %v5888_v50 = vld [vmem:[#allocation7 + $0x6a0] ss:$16 sps:$4 sm:$0xff]   ;;  %v5891_v51 = vld [vmem:[#allocation7 + $0x6a8] ss:$16 sps:$4 sm:$0xff]  }
 0x1d3   :  { %3956 = vmatprep.subr.bf16.mxu0 %v5836_v54  ;;  %4284 = vmatprep.subr.bf16.mxu1 %v5839_v37  ;;  %v5896_v54 = vld [vmem:[#allocation7 + $0x6c4] ss:$16 sps:$4 sm:$0xff]   ;;  %v5899_v37 = vld [vmem:[#allocation7 + $0x6cc] ss:$16 sps:$4 sm:$0xff]  }
 0x1d6   :  { %3957 = vmatpush1.bf16.msra.mxu0 %v5834_v57  ;;  %4285 = vmatpush1.bf16.msra.mxu1 %v5837_v58  ;;  %v5894_v57 = vld [vmem:[#allocation7 + $0x6c0] ss:$16 sps:$4 sm:$0xff]   ;;  %v5897_v58 = vld [vmem:[#allocation7 + $0x6c8] ss:$16 sps:$4 sm:$0xff]  }
 0x1d7   :  { %3958 = vmatprep.subr.bf16.mxu0 %v5842_v59  ;;  %4286 = vmatprep.subr.bf16.mxu1 %v5845_v60  ;;  %v5902_v59 = vld [vmem:[#allocation7 + $0x6e4] ss:$16 sps:$4 sm:$0xff]   ;;  %v5905_v60 = vld [vmem:[#allocation7 + $0x6ec] ss:$16 sps:$4 sm:$0xff]  }
 0x1da   :  { %3959 = vmatpush1.bf16.msra.mxu0 %v5840_v62  ;;  %4287 = vmatpush1.bf16.msra.mxu1 %v5843_v63  ;;  %v5903_v62 = vld [vmem:[#allocation7 + $0x6e8] ss:$16 sps:$4 sm:$0xff]   ;;  %v5908_v63 = vld [vmem:[#allocation7 + $0x704] ss:$16 sps:$4 sm:$0xff]  }
 0x1db   :  { %3960 = vmatprep.subr.bf16.mxu0 %v5848_v1  ;;  %4288 = vmatprep.subr.bf16.mxu1 %v5851_v2  ;;  %v5911_v1 = vld [vmem:[#allocation7 + $0x70c] ss:$16 sps:$4 sm:$0xff]   ;;  %v5906_v2 = vld [vmem:[#allocation7 + $0x700] ss:$16 sps:$4 sm:$0xff]  }
 0x1de   :  { %3961 = vmatpush1.bf16.msra.mxu0 %v5846_v12  ;;  %4289 = vmatpush1.bf16.msra.mxu1 %v5849_v13  ;;  %v5917_v12 = vld [vmem:[#allocation7 + $0x72c] ss:$16 sps:$4 sm:$0xff]   ;;  %v5912_v13 = vld [vmem:[#allocation7 + $0x720] ss:$16 sps:$4 sm:$0xff]  }
 0x1df   :  { %3962 = vmatprep.subr.bf16.mxu0 %v5854_v3  ;;  %4290 = vmatprep.subr.bf16.mxu1 %v5857_v14  ;;  %v5915_v3 = vld [vmem:[#allocation7 + $0x728] ss:$16 sps:$4 sm:$0xff]   ;;  %v5920_v14 = vld [vmem:[#allocation7 + $0x744] ss:$16 sps:$4 sm:$0xff]  }
 0x1e2   :  { %3963 = vmatpush1.bf16.msra.mxu0 %v5852_v21  ;;  %4291 = vmatpush1.bf16.msra.mxu1 %v5855_v23  ;;  %v5921_v21 = vld [vmem:[#allocation7 + $0x748] ss:$16 sps:$4 sm:$0xff]   ;;  %v5926_v23 = vld [vmem:[#allocation7 + $0x764] ss:$16 sps:$4 sm:$0xff]  }
 0x1e3   :  { %3973 = vmatprep.subr.bf16.mxu0 %v5860_v9  ;;  %4301 = vmatprep.subr.bf16.mxu1 %v5863_v20  ;;  %v5929_v9 = vld [vmem:[#allocation7 + $0x76c] ss:$16 sps:$4 sm:$0xff]   ;;  %v5924_v20 = vld [vmem:[#allocation7 + $0x760] ss:$16 sps:$4 sm:$0xff]  }
 0x1e5   :  { %3965 = vmatmul.mubr.bf16.vlgmr.msra.gmra.mrb[16].mxu0 %v744_v24  ;;  %4293 = vmatmul.mubr.bf16.vlgmr.msra.gmra.mrb[16].mxu1 %v744_v24  ;;  %v5932_v24 = vld [vmem:[#allocation7 + $0x784] ss:$16 sps:$4 sm:$0xff]  }
 0x1e6   :  { %3974 = vmatpush1.bf16.msra.mxu0 %v5858_v25  ;;  %4302 = vmatpush1.bf16.msra.mxu1 %v5861_v26  ;;  %v5935_v25 = vld [vmem:[#allocation7 + $0x78c] ss:$16 sps:$4 sm:$0xff]   ;;  %v5930_v26 = vld [vmem:[#allocation7 + $0x780] ss:$16 sps:$4 sm:$0xff]  }
 0x1e7   :  { %3975 = vmatprep.subr.bf16.mxu0 %v5866_v27  ;;  %4303 = vmatprep.subr.bf16.mxu1 %v5869_v28  ;;  %v5933_v27 = vld [vmem:[#allocation7 + $0x788] ss:$16 sps:$4 sm:$0xff]   ;;  %v5938_v28 = vld [vmem:[#allocation7 + $0x7a4] ss:$16 sps:$4 sm:$0xff]  }
 0x1e8   :  { %4005 = vmatprep.mubr.bf16.mxu0 %v747_v44  ;;  %4333 = vmatprep.mubr.bf16.mxu1 %v747_v44  ;;  %v5941_v44 = vld [vmem:[#allocation7 + $0x7ac] ss:$16 sps:$4 sm:$0xff]  }
 0x1ea   :  { %3976 = vmatpush1.bf16.msra.mxu0 %v5864_v29  ;;  %4304 = vmatpush1.bf16.msra.mxu1 %v5867_v30  ;;  %v5936_v29 = vld [vmem:[#allocation7 + $0x7a0] ss:$16 sps:$4 sm:$0xff]   ;;  %v5939_v30 = vld [vmem:[#allocation7 + $0x7a8] ss:$16 sps:$4 sm:$0xff]  }
 0x1eb   :  { %3977 = vmatprep.subr.bf16.mxu0 %v5872_v31  ;;  %4305 = vmatprep.subr.bf16.mxu1 %v5875_v32  ;;  %v6370_v31 = vld [vmem:[#allocation6] sm:$0xff] }
 0x1ec   :  { %v179_v32 = vrot.slane %v6370_v31, %v178_v18  ;;  %v5948_v18 = vld [vmem:[#allocation7 + $0x7e0] ss:$16 sps:$4 sm:$0xff]   ;;  %v6010_v31 = vld [vmem:[#allocation7 + $0x924] ss:$16 sps:$4 sm:$0xff]  }
 0x1ee   :  { %3978 = vmatpush1.bf16.msra.mxu0 %v5870_v35  ;;  %4306 = vmatpush1.bf16.msra.mxu1 %v5873_v39  ;;  %v5944_v35 = vld [vmem:[#allocation7 + $0x7c4] ss:$16 sps:$4 sm:$0xff]   ;;  %v5947_v39 = vld [vmem:[#allocation7 + $0x7cc] ss:$16 sps:$4 sm:$0xff]  }
 0x1ef   :  { %3979 = vmatprep.subr.bf16.mxu0 %v5878_v40  ;;  %4307 = vmatprep.subr.bf16.mxu1 %v5881_v42  ;;  %v191_v40 = vrot.slane %v6734_v55, %v6708_v10  ;;  %v5942_v42 = vld [vmem:[#allocation7 + $0x7c0] ss:$16 sps:$4 sm:$0xff]   ;;  %v5956_v55 = vld [vmem:[#allocation7 + $0x804] ss:$16 sps:$4 sm:$0xff]  }
 0x1f1   :  { %v597_v7 = vadd.f32 %v6736_v56, %v191_v40  ;;  %v5965_v56 = vld [vmem:[#allocation7 + $0x82c] ss:$16 sps:$4 sm:$0xff]   ;;  %v6016_v40 = vld [vmem:[#allocation7 + $0x944] ss:$16 sps:$4 sm:$0xff]  }
 0x1f2   :  { %3980 = vmatpush1.bf16.msra.mxu0 %v5876_v43  ;;  %4308 = vmatpush1.bf16.msra.mxu1 %v5879_v19  ;;  %v5945_v43 = vld [vmem:[#allocation7 + $0x7c8] ss:$16 sps:$4 sm:$0xff]   ;;  %v554_v19 = vadd.f32 %v6725_v41, %v179_v32  ;;  %v6013_v32 = vld [vmem:[#allocation7 + $0x92c] ss:$16 sps:$4 sm:$0xff]  }
 0x1f3   :  { %3981 = vmatprep.subr.bf16.mxu0 %v5884_v45  ;;  %4309 = vmatprep.subr.bf16.mxu1 %v5887_v46  ;;  %v5950_v45 = vld [vmem:[#allocation7 + $0x7e4] ss:$16 sps:$4 sm:$0xff]   ;;  %v5953_v46 = vld [vmem:[#allocation7 + $0x7ec] ss:$16 sps:$4 sm:$0xff]  }
 0x1f6   :  { %3982 = vmatpush1.bf16.msra.mxu0 %v5882_v17  ;;  %4310 = vmatpush1.bf16.msra.mxu1 %v5885_v47  ;;  %v5951_v17 = vld [vmem:[#allocation7 + $0x7e8] ss:$16 sps:$4 sm:$0xff]   ;;  %v730_v47 = vmax.f32 %v554_v19, 0.0 }
 0x1f7   :  { %3983 = vmatprep.subr.bf16.mxu0 %v5890_v48  ;;  %4311 = vmatprep.subr.bf16.mxu1 %v5893_v49  ;;  %v5959_v48 = vld [vmem:[#allocation7 + $0x80c] ss:$16 sps:$4 sm:$0xff]   ;;  %v733_v49 = vmax.f32 %v597_v7, 0.0  ;;  %v6017_v19 = vld [vmem:[#allocation7 + $0x948] ss:$16 sps:$4 sm:$0xff]  }
 0x1f8   :  { %v746_v41 = vpack.c.bf16 %v730_v47, %v730_v47  ;;  %v6020_v7 = vld [vmem:[#allocation7 + $0x960] ss:$16 sps:$4 sm:$0xff]   ;;  %v6031_v47 = vld [vmem:[#allocation7 + $0x98c] ss:$16 sps:$4 sm:$0xff]  }
 0x1fa   :  { %3984 = vmatpush1.bf16.msra.mxu0 %v5888_v50  ;;  %4312 = vmatpush1.bf16.msra.mxu1 %v5891_v51  ;;  %v5954_v50 = vld [vmem:[#allocation7 + $0x800] ss:$16 sps:$4 sm:$0xff]   ;;  %v5957_v51 = vld [vmem:[#allocation7 + $0x808] ss:$16 sps:$4 sm:$0xff]  }
 0x1fb   :  { %3985 = vmatprep.subr.bf16.mxu0 %v5896_v54  ;;  %4313 = vmatprep.subr.bf16.mxu1 %v5899_v37  ;;  %v749_v54 = vpack.c.bf16 %v733_v49, %v733_v49  ;;  %v5962_v37 = vld [vmem:[#allocation7 + $0x824] ss:$16 sps:$4 sm:$0xff]  }
 0x1fc   :  { %v6034_v49 = vld [vmem:[#allocation7 + $0x9a4] ss:$16 sps:$4 sm:$0xff]  }
 0x1fe   :  { %3986 = vmatpush1.bf16.msra.mxu0 %v5894_v57  ;;  %4314 = vmatpush1.bf16.msra.mxu1 %v5897_v58  ;;  %v5960_v57 = vld [vmem:[#allocation7 + $0x820] ss:$16 sps:$4 sm:$0xff]   ;;  %v5963_v58 = vld [vmem:[#allocation7 + $0x828] ss:$16 sps:$4 sm:$0xff]  }
 0x1ff   :  { %3987 = vmatprep.subr.bf16.mxu0 %v5902_v59  ;;  %4315 = vmatprep.subr.bf16.mxu1 %v5905_v60  ;;  %v5968_v59 = vld [vmem:[#allocation7 + $0x844] ss:$16 sps:$4 sm:$0xff]   ;;  %v5971_v60 = vld [vmem:[#allocation7 + $0x84c] ss:$16 sps:$4 sm:$0xff]  }
 0x202   :  { %3988 = vmatpush1.bf16.msra.mxu0 %v5900_v61  ;;  %4316 = vmatpush1.bf16.msra.mxu1 %v5903_v62  ;;  %v5966_v61 = vld [vmem:[#allocation7 + $0x840] ss:$16 sps:$4 sm:$0xff]   ;;  %v5969_v62 = vld [vmem:[#allocation7 + $0x848] ss:$16 sps:$4 sm:$0xff]  }
 0x203   :  { %3989 = vmatprep.subr.bf16.mxu0 %v5908_v63  ;;  %4317 = vmatprep.subr.bf16.mxu1 %v5911_v1  ;;  %v5974_v63 = vld [vmem:[#allocation7 + $0x864] ss:$16 sps:$4 sm:$0xff]   ;;  %v5977_v1 = vld [vmem:[#allocation7 + $0x86c] ss:$16 sps:$4 sm:$0xff]  }
 0x206   :  { %3990 = vmatpush1.bf16.msra.mxu0 %v5906_v2  ;;  %4318 = vmatpush1.bf16.msra.mxu1 %v5909_v6  ;;  %v5972_v2 = vld [vmem:[#allocation7 + $0x860] ss:$16 sps:$4 sm:$0xff]   ;;  %v5975_v6 = vld [vmem:[#allocation7 + $0x868] ss:$16 sps:$4 sm:$0xff]  }
 0x207   :  { %3991 = vmatprep.subr.bf16.mxu0 %v5914_v11  ;;  %4319 = vmatprep.subr.bf16.mxu1 %v5917_v12  ;;  %v5980_v11 = vld [vmem:[#allocation7 + $0x884] ss:$16 sps:$4 sm:$0xff]   ;;  %v5983_v12 = vld [vmem:[#allocation7 + $0x88c] ss:$16 sps:$4 sm:$0xff]  }
 0x20a   :  { %3992 = vmatpush1.bf16.msra.mxu0 %v5912_v13  ;;  %4320 = vmatpush1.bf16.msra.mxu1 %v5915_v3  ;;  %v5978_v13 = vld [vmem:[#allocation7 + $0x880] ss:$16 sps:$4 sm:$0xff]   ;;  %v5981_v3 = vld [vmem:[#allocation7 + $0x888] ss:$16 sps:$4 sm:$0xff]  }
 0x20b   :  { %3993 = vmatprep.subr.bf16.mxu0 %v5920_v14  ;;  %4321 = vmatprep.subr.bf16.mxu1 %v5923_v15  ;;  %v5986_v14 = vld [vmem:[#allocation7 + $0x8a4] ss:$16 sps:$4 sm:$0xff]   ;;  %v5989_v15 = vld [vmem:[#allocation7 + $0x8ac] ss:$16 sps:$4 sm:$0xff]  }
 0x20e   :  { %3994 = vmatpush1.bf16.msra.mxu0 %v5918_v16  ;;  %4322 = vmatpush1.bf16.msra.mxu1 %v5921_v21  ;;  %v5984_v16 = vld [vmem:[#allocation7 + $0x8a0] ss:$16 sps:$4 sm:$0xff]   ;;  %v5987_v21 = vld [vmem:[#allocation7 + $0x8a8] ss:$16 sps:$4 sm:$0xff]  }
 0x20f   :  { %3995 = vmatprep.subr.bf16.mxu0 %v5926_v23  ;;  %4323 = vmatprep.subr.bf16.mxu1 %v5929_v9  ;;  %v5992_v23 = vld [vmem:[#allocation7 + $0x8c4] ss:$16 sps:$4 sm:$0xff]   ;;  %v5995_v9 = vld [vmem:[#allocation7 + $0x8cc] ss:$16 sps:$4 sm:$0xff]  }
 0x212   :  { %3996 = vmatpush1.bf16.msra.mxu0 %v5924_v20  ;;  %4324 = vmatpush1.bf16.msra.mxu1 %v5927_v36  ;;  %v5990_v20 = vld [vmem:[#allocation7 + $0x8c0] ss:$16 sps:$4 sm:$0xff]   ;;  %v5993_v36 = vld [vmem:[#allocation7 + $0x8c8] ss:$16 sps:$4 sm:$0xff]  }
 0x213   :  { %3997 = vmatprep.subr.bf16.mxu0 %v5932_v24  ;;  %4325 = vmatprep.subr.bf16.mxu1 %v5935_v25  ;;  %v5998_v24 = vld [vmem:[#allocation7 + $0x8e4] ss:$16 sps:$4 sm:$0xff]   ;;  %v6001_v25 = vld [vmem:[#allocation7 + $0x8ec] ss:$16 sps:$4 sm:$0xff]  }
 0x216   :  { %3998 = vmatpush1.bf16.msra.mxu0 %v5930_v26  ;;  %4326 = vmatpush1.bf16.msra.mxu1 %v5933_v27  ;;  %v5996_v26 = vld [vmem:[#allocation7 + $0x8e0] ss:$16 sps:$4 sm:$0xff]   ;;  %v5999_v27 = vld [vmem:[#allocation7 + $0x8e8] ss:$16 sps:$4 sm:$0xff]  }
 0x217   :  { %3999 = vmatprep.subr.bf16.mxu0 %v5938_v28  ;;  %4327 = vmatprep.subr.bf16.mxu1 %v5941_v44  ;;  %v6004_v28 = vld [vmem:[#allocation7 + $0x904] ss:$16 sps:$4 sm:$0xff]   ;;  %v6007_v44 = vld [vmem:[#allocation7 + $0x90c] ss:$16 sps:$4 sm:$0xff]  }
 0x21a   :  { %4000 = vmatpush1.bf16.msra.mxu0 %v5936_v29  ;;  %4328 = vmatpush1.bf16.msra.mxu1 %v5939_v30  ;;  %v6002_v29 = vld [vmem:[#allocation7 + $0x900] ss:$16 sps:$4 sm:$0xff]   ;;  %v6005_v30 = vld [vmem:[#allocation7 + $0x908] ss:$16 sps:$4 sm:$0xff]  }
 0x21b   :  { %4001 = vmatprep.subr.bf16.mxu0 %v5944_v35  ;;  %4329 = vmatprep.subr.bf16.mxu1 %v5947_v39  ;;  %v6008_v35 = vld [vmem:[#allocation7 + $0x920] ss:$16 sps:$4 sm:$0xff]   ;;  %v6011_v39 = vld [vmem:[#allocation7 + $0x928] ss:$16 sps:$4 sm:$0xff]  }
 0x21e   :  { %4002 = vmatpush1.bf16.msra.mxu0 %v5942_v42  ;;  %4330 = vmatpush1.bf16.msra.mxu1 %v5945_v43  ;;  %v6019_v42 = vld [vmem:[#allocation7 + $0x94c] ss:$16 sps:$4 sm:$0xff]   ;;  %v6014_v43 = vld [vmem:[#allocation7 + $0x940] ss:$16 sps:$4 sm:$0xff]  }
 0x21f   :  { %4003 = vmatprep.subr.bf16.mxu0 %v5950_v45  ;;  %4331 = vmatprep.subr.bf16.mxu1 %v5953_v46  ;;  %v6022_v45 = vld [vmem:[#allocation7 + $0x964] ss:$16 sps:$4 sm:$0xff]   ;;  %v6025_v46 = vld [vmem:[#allocation7 + $0x96c] ss:$16 sps:$4 sm:$0xff]  }
 0x222   :  { %4004 = vmatpush1.bf16.msra.mxu0 %v5948_v18  ;;  %4332 = vmatpush1.bf16.msra.mxu1 %v5951_v17  ;;  %v6023_v18 = vld [vmem:[#allocation7 + $0x968] ss:$16 sps:$4 sm:$0xff]   ;;  %v6028_v17 = vld [vmem:[#allocation7 + $0x984] ss:$16 sps:$4 sm:$0xff]  }
 0x223   :  { %4014 = vmatprep.subr.bf16.mxu0 %v5956_v55  ;;  %4342 = vmatprep.subr.bf16.mxu1 %v5959_v48  ;;  %v6026_v55 = vld [vmem:[#allocation7 + $0x980] ss:$16 sps:$4 sm:$0xff]   ;;  %v6029_v48 = vld [vmem:[#allocation7 + $0x988] ss:$16 sps:$4 sm:$0xff]  }
 0x225   :  { %4006 = vmatmul.mubr.bf16.vlgmr.msra.gmra.mrb[16].mxu0 %v746_v41  ;;  %4334 = vmatmul.mubr.bf16.vlgmr.msra.gmra.mrb[16].mxu1 %v746_v41  ;;  %v6032_v41 = vld [vmem:[#allocation7 + $0x9a0] ss:$16 sps:$4 sm:$0xff]  }
 0x226   :  { %4015 = vmatpush1.bf16.msra.mxu0 %v5954_v50  ;;  %4046 = vmatprep.mubr.bf16.mxu0 %v749_v54  ;;  %v6037_v50 = vld [vmem:[#allocation7 + $0x9ac] ss:$16 sps:$4 sm:$0xff]  }
 0x227   :  { %4343 = vmatpush1.bf16.msra.mxu1 %v5957_v51  ;;  %4374 = vmatprep.mubr.bf16.mxu1 %v749_v54  ;;  %v6371_v51 = vld [vmem:[#allocation6 + $0x8] sm:$0xff] }
 0x228   :  { %4016 = vmatprep.subr.bf16.mxu0 %v5962_v37  ;;  %4344 = vmatprep.subr.bf16.mxu1 %v5965_v56  ;;  %v187_v54 = vrot.slane %v6371_v51, %v6703_v8  ;;  %v6035_v37 = vld [vmem:[#allocation7 + $0x9a8] ss:$16 sps:$4 sm:$0xff]   ;;  %v6040_v56 = vld [vmem:[#allocation7 + $0x9c4] ss:$16 sps:$4 sm:$0xff]  }
 0x229   :  { %v6107_v51 = vld [vmem:[#allocation7 + $0xb28] ss:$16 sps:$4 sm:$0xff]  }
 0x22a   :  { %4017 = vmatpush1.bf16.msra.mxu0 %v5960_v57  ;;  %v6043_v57 = vld [vmem:[#allocation7 + $0x9cc] ss:$16 sps:$4 sm:$0xff]  }
 0x22b   :  { %4345 = vmatpush1.bf16.msra.mxu1 %v5963_v58  ;;  %4018 = vmatprep.subr.bf16.mxu0 %v5968_v59  ;;  %v6038_v58 = vld [vmem:[#allocation7 + $0x9c0] ss:$16 sps:$4 sm:$0xff]   ;;  %v595_v59 = vadd.f32 %v6729_v52, %v187_v54  ;;  %v6112_v54 = vld [vmem:[#allocation7 + $0xb44] ss:$16 sps:$4 sm:$0xff]  }
 0x22c   :  { %4346 = vmatprep.subr.bf16.mxu1 %v5971_v60  ;;  %v6041_v60 = vld [vmem:[#allocation7 + $0x9c8] ss:$16 sps:$4 sm:$0xff]  }
 0x22e   :  { %4019 = vmatpush1.bf16.msra.mxu0 %v5966_v61  ;;  %v6046_v61 = vld [vmem:[#allocation7 + $0x9e4] ss:$16 sps:$4 sm:$0xff]  }
 0x22f   :  { %4347 = vmatpush1.bf16.msra.mxu1 %v5969_v62  ;;  %4020 = vmatprep.subr.bf16.mxu0 %v5974_v63  ;;  %v6049_v62 = vld [vmem:[#allocation7 + $0x9ec] ss:$16 sps:$4 sm:$0xff]   ;;  %v6044_v63 = vld [vmem:[#allocation7 + $0x9e0] ss:$16 sps:$4 sm:$0xff]  }
 0x230   :  { %4348 = vmatprep.subr.bf16.mxu1 %v5977_v1  ;;  %v732_v1 = vmax.f32 %v595_v59, 0.0  ;;  %v6121_v59 = vld [vmem:[#allocation7 + $0xb6c] ss:$16 sps:$4 sm:$0xff]  }
 0x232   :  { %4021 = vmatpush1.bf16.msra.mxu0 %v5972_v2  ;;  %v6047_v2 = vld [vmem:[#allocation7 + $0x9e8] ss:$16 sps:$4 sm:$0xff]   ;;  %v748_v52 = vpack.c.bf16 %v732_v1, %v732_v1  ;;  %v6122_v1 = vld [vmem:[#allocation7 + $0xb80] ss:$16 sps:$4 sm:$0xff]  }
 0x233   :  { %4349 = vmatpush1.bf16.msra.mxu1 %v5975_v6  ;;  %4022 = vmatprep.subr.bf16.mxu0 %v5980_v11  ;;  %v6052_v6 = vld [vmem:[#allocation7 + $0xa04] ss:$16 sps:$4 sm:$0xff]   ;;  %v6055_v11 = vld [vmem:[#allocation7 + $0xa0c] ss:$16 sps:$4 sm:$0xff]  }
 0x234   :  { %4350 = vmatprep.subr.bf16.mxu1 %v5983_v12  ;;  %v735_v12 = vmax.f32 %v6745_v5, 0.0  ;;  %v6067_v5 = vld [vmem:[#allocation7 + $0xa4c] ss:$16 sps:$4 sm:$0xff]  }
 0x236   :  { %4023 = vmatpush1.bf16.msra.mxu0 %v5978_v13  ;;  %v6050_v13 = vld [vmem:[#allocation7 + $0xa00] ss:$16 sps:$4 sm:$0xff]  }
 0x237   :  { %4351 = vmatpush1.bf16.msra.mxu1 %v5981_v3  ;;  %4024 = vmatprep.subr.bf16.mxu0 %v5986_v14  ;;  %v6053_v3 = vld [vmem:[#allocation7 + $0xa08] ss:$16 sps:$4 sm:$0xff]   ;;  %v6058_v14 = vld [vmem:[#allocation7 + $0xa24] ss:$16 sps:$4 sm:$0xff]  }
 0x238   :  { %4352 = vmatprep.subr.bf16.mxu1 %v5989_v15  ;;  %v751_v15 = vpack.c.bf16 %v735_v12, %v735_v12  ;;  %v6128_v12 = vld [vmem:[#allocation7 + $0xba0] ss:$16 sps:$4 sm:$0xff]  }
 0x23a   :  { %4025 = vmatpush1.bf16.msra.mxu0 %v5984_v16  ;;  %v6061_v16 = vld [vmem:[#allocation7 + $0xa2c] ss:$16 sps:$4 sm:$0xff]  }
 0x23b   :  { %4353 = vmatpush1.bf16.msra.mxu1 %v5987_v21  ;;  %4026 = vmatprep.subr.bf16.mxu0 %v5992_v23  ;;  %v6056_v21 = vld [vmem:[#allocation7 + $0xa20] ss:$16 sps:$4 sm:$0xff]   ;;  %v6059_v23 = vld [vmem:[#allocation7 + $0xa28] ss:$16 sps:$4 sm:$0xff]  }
 0x23c   :  { %4354 = vmatprep.subr.bf16.mxu1 %v5995_v9  ;;  %v6064_v9 = vld [vmem:[#allocation7 + $0xa44] ss:$16 sps:$4 sm:$0xff]  }
 0x23e   :  { %4027 = vmatpush1.bf16.msra.mxu0 %v5990_v20  ;;  %v6062_v20 = vld [vmem:[#allocation7 + $0xa40] ss:$16 sps:$4 sm:$0xff]  }
 0x23f   :  { %4355 = vmatpush1.bf16.msra.mxu1 %v5993_v36  ;;  %4028 = vmatprep.subr.bf16.mxu0 %v5998_v24  ;;  %v6065_v36 = vld [vmem:[#allocation7 + $0xa48] ss:$16 sps:$4 sm:$0xff]   ;;  %v6070_v24 = vld [vmem:[#allocation7 + $0xa64] ss:$16 sps:$4 sm:$0xff]  }
 0x240   :  { %4356 = vmatprep.subr.bf16.mxu1 %v6001_v25  ;;  %v6073_v25 = vld [vmem:[#allocation7 + $0xa6c] ss:$16 sps:$4 sm:$0xff]  }
 0x242   :  { %4029 = vmatpush1.bf16.msra.mxu0 %v5996_v26  ;;  %v6068_v26 = vld [vmem:[#allocation7 + $0xa60] ss:$16 sps:$4 sm:$0xff]  }
 0x243   :  { %4357 = vmatpush1.bf16.msra.mxu1 %v5999_v27  ;;  %4030 = vmatprep.subr.bf16.mxu0 %v6004_v28  ;;  %v6071_v27 = vld [vmem:[#allocation7 + $0xa68] ss:$16 sps:$4 sm:$0xff]   ;;  %v6076_v28 = vld [vmem:[#allocation7 + $0xa84] ss:$16 sps:$4 sm:$0xff]  }
 0x244   :  { %4358 = vmatprep.subr.bf16.mxu1 %v6007_v44  ;;  %v6079_v44 = vld [vmem:[#allocation7 + $0xa8c] ss:$16 sps:$4 sm:$0xff]  }
 0x246   :  { %4031 = vmatpush1.bf16.msra.mxu0 %v6002_v29  ;;  %v6074_v29 = vld [vmem:[#allocation7 + $0xa80] ss:$16 sps:$4 sm:$0xff]  }
 0x247   :  { %4359 = vmatpush1.bf16.msra.mxu1 %v6005_v30  ;;  %4032 = vmatprep.subr.bf16.mxu0 %v6010_v31  ;;  %v6077_v30 = vld [vmem:[#allocation7 + $0xa88] ss:$16 sps:$4 sm:$0xff]   ;;  %v6082_v31 = vld [vmem:[#allocation7 + $0xaa4] ss:$16 sps:$4 sm:$0xff]  }
 0x248   :  { %4360 = vmatprep.subr.bf16.mxu1 %v6013_v32  ;;  %v6085_v32 = vld [vmem:[#allocation7 + $0xaac] ss:$16 sps:$4 sm:$0xff]  }
 0x24a   :  { %4033 = vmatpush1.bf16.msra.mxu0 %v6008_v35  ;;  %v6080_v35 = vld [vmem:[#allocation7 + $0xaa0] ss:$16 sps:$4 sm:$0xff]  }
 0x24b   :  { %4361 = vmatpush1.bf16.msra.mxu1 %v6011_v39  ;;  %4034 = vmatprep.subr.bf16.mxu0 %v6016_v40  ;;  %v6083_v39 = vld [vmem:[#allocation7 + $0xaa8] ss:$16 sps:$4 sm:$0xff]   ;;  %v6088_v40 = vld [vmem:[#allocation7 + $0xac4] ss:$16 sps:$4 sm:$0xff]  }
 0x24c   :  { %4362 = vmatprep.subr.bf16.mxu1 %v6019_v42  ;;  %v6091_v42 = vld [vmem:[#allocation7 + $0xacc] ss:$16 sps:$4 sm:$0xff]  }
 0x24e   :  { %4035 = vmatpush1.bf16.msra.mxu0 %v6014_v43  ;;  %v6086_v43 = vld [vmem:[#allocation7 + $0xac0] ss:$16 sps:$4 sm:$0xff]  }
 0x24f   :  { %4363 = vmatpush1.bf16.msra.mxu1 %v6017_v19  ;;  %4036 = vmatprep.subr.bf16.mxu0 %v6022_v45  ;;  %v6089_v19 = vld [vmem:[#allocation7 + $0xac8] ss:$16 sps:$4 sm:$0xff]   ;;  %v6094_v45 = vld [vmem:[#allocation7 + $0xae4] ss:$16 sps:$4 sm:$0xff]  }
 0x250   :  { %4364 = vmatprep.subr.bf16.mxu1 %v6025_v46  ;;  %v6097_v46 = vld [vmem:[#allocation7 + $0xaec] ss:$16 sps:$4 sm:$0xff]  }
 0x252   :  { %4037 = vmatpush1.bf16.msra.mxu0 %v6020_v7  ;;  %v6092_v7 = vld [vmem:[#allocation7 + $0xae0] ss:$16 sps:$4 sm:$0xff]  }
 0x253   :  { %4365 = vmatpush1.bf16.msra.mxu1 %v6023_v18  ;;  %4038 = vmatprep.subr.bf16.mxu0 %v6028_v17  ;;  %v6095_v18 = vld [vmem:[#allocation7 + $0xae8] ss:$16 sps:$4 sm:$0xff]   ;;  %v6100_v17 = vld [vmem:[#allocation7 + $0xb04] ss:$16 sps:$4 sm:$0xff]  }
 0x254   :  { %4366 = vmatprep.subr.bf16.mxu1 %v6031_v47  ;;  %v6103_v47 = vld [vmem:[#allocation7 + $0xb0c] ss:$16 sps:$4 sm:$0xff]  }
 0x256   :  { %4039 = vmatpush1.bf16.msra.mxu0 %v6026_v55  ;;  %v6098_v55 = vld [vmem:[#allocation7 + $0xb00] ss:$16 sps:$4 sm:$0xff]  }
 0x257   :  { %4367 = vmatpush1.bf16.msra.mxu1 %v6029_v48  ;;  %4040 = vmatprep.subr.bf16.mxu0 %v6034_v49  ;;  %v6101_v48 = vld [vmem:[#allocation7 + $0xb08] ss:$16 sps:$4 sm:$0xff]   ;;  %v6106_v49 = vld [vmem:[#allocation7 + $0xb24] ss:$16 sps:$4 sm:$0xff]  }
 0x258   :  { %4368 = vmatprep.subr.bf16.mxu1 %v6037_v50  ;;  %v6109_v50 = vld [vmem:[#allocation7 + $0xb2c] ss:$16 sps:$4 sm:$0xff]  }
 0x25a   :  { %4041 = vmatpush1.bf16.msra.mxu0 %v6032_v41  ;;  %v6104_v41 = vld [vmem:[#allocation7 + $0xb20] ss:$16 sps:$4 sm:$0xff]  }
 0x25b   :  { %4369 = vmatpush1.bf16.msra.mxu1 %v6035_v37  ;;  %4042 = vmatprep.subr.bf16.mxu0 %v6040_v56  ;;  %v6115_v37 = vld [vmem:[#allocation7 + $0xb4c] ss:$16 sps:$4 sm:$0xff]   ;;  %v6110_v56 = vld [vmem:[#allocation7 + $0xb40] ss:$16 sps:$4 sm:$0xff]  }
 0x25c   :  { %4370 = vmatprep.subr.bf16.mxu1 %v6043_v57  ;;  %v6113_v57 = vld [vmem:[#allocation7 + $0xb48] ss:$16 sps:$4 sm:$0xff]  }
 0x25e   :  { %4043 = vmatpush1.bf16.msra.mxu0 %v6038_v58  ;;  %v6118_v58 = vld [vmem:[#allocation7 + $0xb64] ss:$16 sps:$4 sm:$0xff]  }
 0x25f   :  { %4371 = vmatpush1.bf16.msra.mxu1 %v6041_v60  ;;  %4044 = vmatprep.subr.bf16.mxu0 %v6046_v61  ;;  %v6116_v60 = vld [vmem:[#allocation7 + $0xb60] ss:$16 sps:$4 sm:$0xff]   ;;  %v6119_v61 = vld [vmem:[#allocation7 + $0xb68] ss:$16 sps:$4 sm:$0xff]  }
 0x260   :  { %4372 = vmatprep.subr.bf16.mxu1 %v6049_v62  ;;  %v6124_v62 = vld [vmem:[#allocation7 + $0xb84] ss:$16 sps:$4 sm:$0xff]  }
 0x262   :  { %4045 = vmatpush1.bf16.msra.mxu0 %v6044_v63  ;;  %v6127_v63 = vld [vmem:[#allocation7 + $0xb8c] ss:$16 sps:$4 sm:$0xff]  }
 0x263   :  { %4373 = vmatpush1.bf16.msra.mxu1 %v6047_v2  ;;  %4055 = vmatprep.subr.bf16.mxu0 %v6052_v6  ;;  %v6125_v2 = vld [vmem:[#allocation7 + $0xb88] ss:$16 sps:$4 sm:$0xff]   ;;  %v6130_v6 = vld [vmem:[#allocation7 + $0xba4] ss:$16 sps:$4 sm:$0xff]  }
 0x264   :  { %4383 = vmatprep.subr.bf16.mxu1 %v6055_v11  ;;  %v6133_v11 = vld [vmem:[#allocation7 + $0xbac] ss:$16 sps:$4 sm:$0xff]  }
 0x265   :  { %4047 = vmatmul.mubr.bf16.vlgmr.msra.gmra.mrb[16].mxu0 %v748_v52 }
 0x266   :  { %4375 = vmatmul.mubr.bf16.vlgmr.msra.gmra.mrb[16].mxu1 %v748_v52  ;;  %4056 = vmatpush1.bf16.msra.mxu0 %v6050_v13  ;;  %v6131_v13 = vld [vmem:[#allocation7 + $0xba8] ss:$16 sps:$4 sm:$0xff]   ;;  %v6136_v52 = vld [vmem:[#allocation7 + $0xbc4] ss:$16 sps:$4 sm:$0xff]  }
 0x267   :  { %4087 = vmatprep.mubr.bf16.mxu0 %v751_v15  ;;  %4384 = vmatpush1.bf16.msra.mxu1 %v6053_v3  ;;  %v6139_v3 = vld [vmem:[#allocation7 + $0xbcc] ss:$16 sps:$4 sm:$0xff]  }
 0x268   :  { %4415 = vmatprep.mubr.bf16.mxu1 %v751_v15  ;;  %4057 = vmatprep.subr.bf16.mxu0 %v6058_v14  ;;  %v6134_v14 = vld [vmem:[#allocation7 + $0xbc0] ss:$16 sps:$4 sm:$0xff]   ;;  %v6137_v15 = vld [vmem:[#allocation7 + $0xbc8] ss:$16 sps:$4 sm:$0xff]  }
 0x269   :  { %4385 = vmatprep.subr.bf16.mxu1 %v6061_v16  ;;  %v6142_v16 = vld [vmem:[#allocation7 + $0xbe4] ss:$16 sps:$4 sm:$0xff]  }
 0x26a   :  { %4058 = vmatpush1.bf16.msra.mxu0 %v6056_v21  ;;  %v6145_v21 = vld [vmem:[#allocation7 + $0xbec] ss:$16 sps:$4 sm:$0xff]  }
 0x26b   :  { %4386 = vmatpush1.bf16.msra.mxu1 %v6059_v23  ;;  %4059 = vmatprep.subr.bf16.mxu0 %v6064_v9  ;;  %v6140_v23 = vld [vmem:[#allocation7 + $0xbe0] ss:$16 sps:$4 sm:$0xff]   ;;  %v734_v9 = vmax.f32 %v6743_v4, 0.0 }
 0x26c   :  { %4387 = vmatprep.subr.bf16.mxu1 %v6067_v5  ;;  %v6143_v5 = vld [vmem:[#allocation7 + $0xbe8] ss:$16 sps:$4 sm:$0xff]   ;;  %v6152_v4 = vld [vmem:[#allocation7 + $0xc20] ss:$16 sps:$4 sm:$0xff]  }
 0x26e   :  { %4060 = vmatpush1.bf16.msra.mxu0 %v6062_v20  ;;  %v6148_v20 = vld [vmem:[#allocation7 + $0xc04] ss:$16 sps:$4 sm:$0xff]  }
 0x26f   :  { %4388 = vmatpush1.bf16.msra.mxu1 %v6065_v36  ;;  %4061 = vmatprep.subr.bf16.mxu0 %v6070_v24  ;;  %v6151_v36 = vld [vmem:[#allocation7 + $0xc0c] ss:$16 sps:$4 sm:$0xff]   ;;  %v737_v24 = vmax.f32 %v6764_v33, 0.0 }
 0x270   :  { %4389 = vmatprep.subr.bf16.mxu1 %v6073_v25  ;;  %v6146_v25 = vld [vmem:[#allocation7 + $0xc00] ss:$16 sps:$4 sm:$0xff]   ;;  %v6163_v33 = vld [vmem:[#allocation7 + $0xc4c] ss:$16 sps:$4 sm:$0xff]  }
 0x272   :  { %4062 = vmatpush1.bf16.msra.mxu0 %v6068_v26  ;;  %v750_v26 = vpack.c.bf16 %v734_v9, %v734_v9  ;;  %v6226_v9 = vld [vmem:[#allocation7 + $0xda4] ss:$16 sps:$4 sm:$0xff]  }
 0x273   :  { %4390 = vmatpush1.bf16.msra.mxu1 %v6071_v27  ;;  %4063 = vmatprep.subr.bf16.mxu0 %v6076_v28  ;;  %v6149_v27 = vld [vmem:[#allocation7 + $0xc08] ss:$16 sps:$4 sm:$0xff]   ;;  %v6154_v28 = vld [vmem:[#allocation7 + $0xc24] ss:$16 sps:$4 sm:$0xff]  }
 0x274   :  { %4391 = vmatprep.subr.bf16.mxu1 %v6079_v44  ;;  %v753_v44 = vpack.c.bf16 %v737_v24, %v737_v24  ;;  %v6232_v24 = vld [vmem:[#allocation7 + $0xdc4] ss:$16 sps:$4 sm:$0xff]  }
 0x276   :  { %4064 = vmatpush1.bf16.msra.mxu0 %v6074_v29  ;;  %v6157_v29 = vld [vmem:[#allocation7 + $0xc2c] ss:$16 sps:$4 sm:$0xff]  }
 0x277   :  { %4392 = vmatpush1.bf16.msra.mxu1 %v6077_v30  ;;  %4065 = vmatprep.subr.bf16.mxu0 %v6082_v31  ;;  %v6155_v30 = vld [vmem:[#allocation7 + $0xc28] ss:$16 sps:$4 sm:$0xff]   ;;  %v6160_v31 = vld [vmem:[#allocation7 + $0xc44] ss:$16 sps:$4 sm:$0xff]  }
 0x278   :  { %4393 = vmatprep.subr.bf16.mxu1 %v6085_v32  ;;  %v6158_v32 = vld [vmem:[#allocation7 + $0xc40] ss:$16 sps:$4 sm:$0xff]  }
 0x27a   :  { %4066 = vmatpush1.bf16.msra.mxu0 %v6080_v35  ;;  %v6161_v35 = vld [vmem:[#allocation7 + $0xc48] ss:$16 sps:$4 sm:$0xff]  }
 0x27b   :  { %4394 = vmatpush1.bf16.msra.mxu1 %v6083_v39  ;;  %4067 = vmatprep.subr.bf16.mxu0 %v6088_v40  ;;  %v6166_v39 = vld [vmem:[#allocation7 + $0xc64] ss:$16 sps:$4 sm:$0xff]   ;;  %v6169_v40 = vld [vmem:[#allocation7 + $0xc6c] ss:$16 sps:$4 sm:$0xff]  }
 0x27c   :  { %4395 = vmatprep.subr.bf16.mxu1 %v6091_v42  ;;  %v6164_v42 = vld [vmem:[#allocation7 + $0xc60] ss:$16 sps:$4 sm:$0xff]  }
 0x27e   :  { %4068 = vmatpush1.bf16.msra.mxu0 %v6086_v43  ;;  %v6167_v43 = vld [vmem:[#allocation7 + $0xc68] ss:$16 sps:$4 sm:$0xff]  }
 0x27f   :  { %4396 = vmatpush1.bf16.msra.mxu1 %v6089_v19  ;;  %4069 = vmatprep.subr.bf16.mxu0 %v6094_v45  ;;  %v6172_v19 = vld [vmem:[#allocation7 + $0xc84] ss:$16 sps:$4 sm:$0xff]   ;;  %v6175_v45 = vld [vmem:[#allocation7 + $0xc8c] ss:$16 sps:$4 sm:$0xff]  }
 0x280   :  { %4397 = vmatprep.subr.bf16.mxu1 %v6097_v46  ;;  %v6170_v46 = vld [vmem:[#allocation7 + $0xc80] ss:$16 sps:$4 sm:$0xff]  }
 0x282   :  { %4070 = vmatpush1.bf16.msra.mxu0 %v6092_v7  ;;  %v6173_v7 = vld [vmem:[#allocation7 + $0xc88] ss:$16 sps:$4 sm:$0xff]  }
 0x283   :  { %4398 = vmatpush1.bf16.msra.mxu1 %v6095_v18  ;;  %4071 = vmatprep.subr.bf16.mxu0 %v6100_v17  ;;  %v6178_v18 = vld [vmem:[#allocation7 + $0xca4] ss:$16 sps:$4 sm:$0xff]   ;;  %v6181_v17 = vld [vmem:[#allocation7 + $0xcac] ss:$16 sps:$4 sm:$0xff]  }
 0x284   :  { %4399 = vmatprep.subr.bf16.mxu1 %v6103_v47  ;;  %v6176_v47 = vld [vmem:[#allocation7 + $0xca0] ss:$16 sps:$4 sm:$0xff]  }
 0x286   :  { %4072 = vmatpush1.bf16.msra.mxu0 %v6098_v55  ;;  %v6179_v55 = vld [vmem:[#allocation7 + $0xca8] ss:$16 sps:$4 sm:$0xff]  }
 0x287   :  { %4400 = vmatpush1.bf16.msra.mxu1 %v6101_v48  ;;  %4073 = vmatprep.subr.bf16.mxu0 %v6106_v49  ;;  %v6184_v48 = vld [vmem:[#allocation7 + $0xcc4] ss:$16 sps:$4 sm:$0xff]   ;;  %v6187_v49 = vld [vmem:[#allocation7 + $0xccc] ss:$16 sps:$4 sm:$0xff]  }
 0x288   :  { %4401 = vmatprep.subr.bf16.mxu1 %v6109_v50  ;;  %v6182_v50 = vld [vmem:[#allocation7 + $0xcc0] ss:$16 sps:$4 sm:$0xff]  }
 0x28a   :  { %4074 = vmatpush1.bf16.msra.mxu0 %v6104_v41  ;;  %v6185_v41 = vld [vmem:[#allocation7 + $0xcc8] ss:$16 sps:$4 sm:$0xff]  }
 0x28b   :  { %4402 = vmatpush1.bf16.msra.mxu1 %v6107_v51  ;;  %4075 = vmatprep.subr.bf16.mxu0 %v6112_v54  ;;  %v6190_v51 = vld [vmem:[#allocation7 + $0xce4] ss:$16 sps:$4 sm:$0xff]   ;;  %v6193_v54 = vld [vmem:[#allocation7 + $0xcec] ss:$16 sps:$4 sm:$0xff]  }
 0x28c   :  { %4403 = vmatprep.subr.bf16.mxu1 %v6115_v37  ;;  %v6188_v37 = vld [vmem:[#allocation7 + $0xce0] ss:$16 sps:$4 sm:$0xff]  }
 0x28e   :  { %4076 = vmatpush1.bf16.msra.mxu0 %v6110_v56  ;;  %v6191_v56 = vld [vmem:[#allocation7 + $0xce8] ss:$16 sps:$4 sm:$0xff]  }
 0x28f   :  { %4404 = vmatpush1.bf16.msra.mxu1 %v6113_v57  ;;  %4077 = vmatprep.subr.bf16.mxu0 %v6118_v58  ;;  %v6196_v57 = vld [vmem:[#allocation7 + $0xd04] ss:$16 sps:$4 sm:$0xff]   ;;  %v6199_v58 = vld [vmem:[#allocation7 + $0xd0c] ss:$16 sps:$4 sm:$0xff]  }
 0x290   :  { %4405 = vmatprep.subr.bf16.mxu1 %v6121_v59  ;;  %v6194_v59 = vld [vmem:[#allocation7 + $0xd00] ss:$16 sps:$4 sm:$0xff]  }
 0x292   :  { %4078 = vmatpush1.bf16.msra.mxu0 %v6116_v60  ;;  %v6197_v60 = vld [vmem:[#allocation7 + $0xd08] ss:$16 sps:$4 sm:$0xff]  }
 0x293   :  { %4406 = vmatpush1.bf16.msra.mxu1 %v6119_v61  ;;  %4079 = vmatprep.subr.bf16.mxu0 %v6124_v62  ;;  %v6202_v61 = vld [vmem:[#allocation7 + $0xd24] ss:$16 sps:$4 sm:$0xff]   ;;  %v6205_v62 = vld [vmem:[#allocation7 + $0xd2c] ss:$16 sps:$4 sm:$0xff]  }
 0x294   :  { %4407 = vmatprep.subr.bf16.mxu1 %v6127_v63  ;;  %v6200_v63 = vld [vmem:[#allocation7 + $0xd20] ss:$16 sps:$4 sm:$0xff]  }
 0x296   :  { %4080 = vmatpush1.bf16.msra.mxu0 %v6122_v1  ;;  %v6203_v1 = vld [vmem:[#allocation7 + $0xd28] ss:$16 sps:$4 sm:$0xff]  }
 0x297   :  { %4408 = vmatpush1.bf16.msra.mxu1 %v6125_v2  ;;  %4081 = vmatprep.subr.bf16.mxu0 %v6130_v6  ;;  %v6208_v2 = vld [vmem:[#allocation7 + $0xd44] ss:$16 sps:$4 sm:$0xff]   ;;  %v6211_v6 = vld [vmem:[#allocation7 + $0xd4c] ss:$16 sps:$4 sm:$0xff]  }
 0x298   :  { %4409 = vmatprep.subr.bf16.mxu1 %v6133_v11  ;;  %v6206_v11 = vld [vmem:[#allocation7 + $0xd40] ss:$16 sps:$4 sm:$0xff]  }
 0x29a   :  { %4082 = vmatpush1.bf16.msra.mxu0 %v6128_v12  ;;  %v6209_v12 = vld [vmem:[#allocation7 + $0xd48] ss:$16 sps:$4 sm:$0xff]  }
 0x29b   :  { %4410 = vmatpush1.bf16.msra.mxu1 %v6131_v13  ;;  %4083 = vmatprep.subr.bf16.mxu0 %v6136_v52  ;;  %v6214_v13 = vld [vmem:[#allocation7 + $0xd64] ss:$16 sps:$4 sm:$0xff]   ;;  %v6217_v52 = vld [vmem:[#allocation7 + $0xd6c] ss:$16 sps:$4 sm:$0xff]  }
 0x29c   :  { %4411 = vmatprep.subr.bf16.mxu1 %v6139_v3  ;;  %v6212_v3 = vld [vmem:[#allocation7 + $0xd60] ss:$16 sps:$4 sm:$0xff]  }
 0x29e   :  { %4084 = vmatpush1.bf16.msra.mxu0 %v6134_v14  ;;  %v6215_v14 = vld [vmem:[#allocation7 + $0xd68] ss:$16 sps:$4 sm:$0xff]  }
 0x29f   :  { %4412 = vmatpush1.bf16.msra.mxu1 %v6137_v15  ;;  %4085 = vmatprep.subr.bf16.mxu0 %v6142_v16  ;;  %v6220_v15 = vld [vmem:[#allocation7 + $0xd84] ss:$16 sps:$4 sm:$0xff]   ;;  %v6223_v16 = vld [vmem:[#allocation7 + $0xd8c] ss:$16 sps:$4 sm:$0xff]  }
 0x2a0   :  { %4413 = vmatprep.subr.bf16.mxu1 %v6145_v21  ;;  %v6218_v21 = vld [vmem:[#allocation7 + $0xd80] ss:$16 sps:$4 sm:$0xff]  }
 0x2a2   :  { %4086 = vmatpush1.bf16.msra.mxu0 %v6140_v23  ;;  %v6221_v23 = vld [vmem:[#allocation7 + $0xd88] ss:$16 sps:$4 sm:$0xff]  }
 0x2a3   :  { %4414 = vmatpush1.bf16.msra.mxu1 %v6143_v5  ;;  %4096 = vmatprep.subr.bf16.mxu0 %v6148_v20  ;;  %v6229_v5 = vld [vmem:[#allocation7 + $0xdac] ss:$16 sps:$4 sm:$0xff]   ;;  %v6224_v20 = vld [vmem:[#allocation7 + $0xda0] ss:$16 sps:$4 sm:$0xff]  }
 0x2a4   :  { %4424 = vmatprep.subr.bf16.mxu1 %v6151_v36  ;;  %v6227_v36 = vld [vmem:[#allocation7 + $0xda8] ss:$16 sps:$4 sm:$0xff]  }
 0x2a5   :  { %4088 = vmatmul.mubr.bf16.vlgmr.msra.gmra.mrb[16].mxu0 %v750_v26 }
 0x2a6   :  { %4416 = vmatmul.mubr.bf16.vlgmr.msra.gmra.mrb[16].mxu1 %v750_v26  ;;  %4097 = vmatpush1.bf16.msra.mxu0 %v6146_v25  ;;  %v6235_v25 = vld [vmem:[#allocation7 + $0xdcc] ss:$16 sps:$4 sm:$0xff]   ;;  %v6230_v26 = vld [vmem:[#allocation7 + $0xdc0] ss:$16 sps:$4 sm:$0xff]  }
 0x2a7   :  { %4128 = vmatprep.mubr.bf16.mxu0 %v753_v44  ;;  %4425 = vmatpush1.bf16.msra.mxu1 %v6149_v27  ;;  %v6233_v27 = vld [vmem:[#allocation7 + $0xdc8] ss:$16 sps:$4 sm:$0xff]  }
 0x2a8   :  { %4456 = vmatprep.mubr.bf16.mxu1 %v753_v44  ;;  %4098 = vmatprep.subr.bf16.mxu0 %v6154_v28  ;;  %v6238_v28 = vld [vmem:[#allocation7 + $0xde4] ss:$16 sps:$4 sm:$0xff]   ;;  %v6241_v44 = vld [vmem:[#allocation7 + $0xdec] ss:$16 sps:$4 sm:$0xff]  }
 0x2a9   :  { %4426 = vmatprep.subr.bf16.mxu1 %v6157_v29  ;;  %v6236_v29 = vld [vmem:[#allocation7 + $0xde0] ss:$16 sps:$4 sm:$0xff]  }
 0x2aa   :  { %4099 = vmatpush1.bf16.msra.mxu0 %v6152_v4  ;;  %v736_v4 = vmax.f32 %v6753_v22, 0.0  ;;  %v6248_v22 = vld [vmem:[#allocation7 + $0xe20] ss:$16 sps:$4 sm:$0xff]  }
 0x2ab   :  { %4427 = vmatpush1.bf16.msra.mxu1 %v6155_v30  ;;  %4100 = vmatprep.subr.bf16.mxu0 %v6160_v31  ;;  %v6239_v30 = vld [vmem:[#allocation7 + $0xde8] ss:$16 sps:$4 sm:$0xff]   ;;  %v6244_v31 = vld [vmem:[#allocation7 + $0xe04] ss:$16 sps:$4 sm:$0xff]  }
 0x2ac   :  { %4428 = vmatprep.subr.bf16.mxu1 %v6163_v33  ;;  %v6247_v33 = vld [vmem:[#allocation7 + $0xe0c] ss:$16 sps:$4 sm:$0xff]  }
 0x2ae   :  { %4101 = vmatpush1.bf16.msra.mxu0 %v6158_v32  ;;  %v739_v32 = vmax.f32 %v6768_v38, 0.0  ;;  %v6259_v38 = vld [vmem:[#allocation7 + $0xe4c] ss:$16 sps:$4 sm:$0xff]  }
 0x2af   :  { %4429 = vmatpush1.bf16.msra.mxu1 %v6161_v35  ;;  %4102 = vmatprep.subr.bf16.mxu0 %v6166_v39  ;;  %v6242_v35 = vld [vmem:[#allocation7 + $0xe00] ss:$16 sps:$4 sm:$0xff]   ;;  %v752_v39 = vpack.c.bf16 %v736_v4, %v736_v4 }
 0x2b0   :  { %4430 = vmatprep.subr.bf16.mxu1 %v6169_v40  ;;  %v6245_v40 = vld [vmem:[#allocation7 + $0xe08] ss:$16 sps:$4 sm:$0xff]   ;;  %v6320_v4 = vld [vmem:[#allocation7 + $0xfa0] ss:$16 sps:$4 sm:$0xff]  }
 0x2b2   :  { %4103 = vmatpush1.bf16.msra.mxu0 %v6164_v42  ;;  %v6250_v42 = vld [vmem:[#allocation7 + $0xe24] ss:$16 sps:$4 sm:$0xff]  }
 0x2b3   :  { %4431 = vmatpush1.bf16.msra.mxu1 %v6167_v43  ;;  %4104 = vmatprep.subr.bf16.mxu0 %v6172_v19  ;;  %v755_v43 = vpack.c.bf16 %v739_v32, %v739_v32  ;;  %v6253_v19 = vld [vmem:[#allocation7 + $0xe2c] ss:$16 sps:$4 sm:$0xff]   ;;  %v6326_v32 = vld [vmem:[#allocation7 + $0xfc0] ss:$16 sps:$4 sm:$0xff]  }
 0x2b4   :  { %4432 = vmatprep.subr.bf16.mxu1 %v6175_v45  ;;  %v6251_v45 = vld [vmem:[#allocation7 + $0xe28] ss:$16 sps:$4 sm:$0xff]  }
 0x2b6   :  { %4105 = vmatpush1.bf16.msra.mxu0 %v6170_v46  ;;  %v6256_v46 = vld [vmem:[#allocation7 + $0xe44] ss:$16 sps:$4 sm:$0xff]  }
 0x2b7   :  { %4433 = vmatpush1.bf16.msra.mxu1 %v6173_v7  ;;  %4106 = vmatprep.subr.bf16.mxu0 %v6178_v18  ;;  %v6254_v7 = vld [vmem:[#allocation7 + $0xe40] ss:$16 sps:$4 sm:$0xff]   ;;  %v6257_v18 = vld [vmem:[#allocation7 + $0xe48] ss:$16 sps:$4 sm:$0xff]  }
 0x2b8   :  { %4434 = vmatprep.subr.bf16.mxu1 %v6181_v17  ;;  %v6262_v17 = vld [vmem:[#allocation7 + $0xe64] ss:$16 sps:$4 sm:$0xff]  }
 0x2ba   :  { %4107 = vmatpush1.bf16.msra.mxu0 %v6176_v47  ;;  %v6265_v47 = vld [vmem:[#allocation7 + $0xe6c] ss:$16 sps:$4 sm:$0xff]  }
 0x2bb   :  { %4435 = vmatpush1.bf16.msra.mxu1 %v6179_v55  ;;  %4108 = vmatprep.subr.bf16.mxu0 %v6184_v48  ;;  %v6260_v55 = vld [vmem:[#allocation7 + $0xe60] ss:$16 sps:$4 sm:$0xff]   ;;  %v6263_v48 = vld [vmem:[#allocation7 + $0xe68] ss:$16 sps:$4 sm:$0xff]  }
 0x2bc   :  { %4436 = vmatprep.subr.bf16.mxu1 %v6187_v49  ;;  %v6268_v49 = vld [vmem:[#allocation7 + $0xe84] ss:$16 sps:$4 sm:$0xff]  }
 0x2be   :  { %4109 = vmatpush1.bf16.msra.mxu0 %v6182_v50  ;;  %v6271_v50 = vld [vmem:[#allocation7 + $0xe8c] ss:$16 sps:$4 sm:$0xff]  }
 0x2bf   :  { %4437 = vmatpush1.bf16.msra.mxu1 %v6185_v41  ;;  %4110 = vmatprep.subr.bf16.mxu0 %v6190_v51  ;;  %v6266_v41 = vld [vmem:[#allocation7 + $0xe80] ss:$16 sps:$4 sm:$0xff]   ;;  %v6269_v51 = vld [vmem:[#allocation7 + $0xe88] ss:$16 sps:$4 sm:$0xff]  }
 0x2c0   :  { %4438 = vmatprep.subr.bf16.mxu1 %v6193_v54  ;;  %v6274_v54 = vld [vmem:[#allocation7 + $0xea4] ss:$16 sps:$4 sm:$0xff]  }
 0x2c2   :  { %4111 = vmatpush1.bf16.msra.mxu0 %v6188_v37  ;;  %v6277_v37 = vld [vmem:[#allocation7 + $0xeac] ss:$16 sps:$4 sm:$0xff]  }
 0x2c3   :  { %4439 = vmatpush1.bf16.msra.mxu1 %v6191_v56  ;;  %4112 = vmatprep.subr.bf16.mxu0 %v6196_v57  ;;  %v6272_v56 = vld [vmem:[#allocation7 + $0xea0] ss:$16 sps:$4 sm:$0xff]   ;;  %v6275_v57 = vld [vmem:[#allocation7 + $0xea8] ss:$16 sps:$4 sm:$0xff]  }
 0x2c4   :  { %4440 = vmatprep.subr.bf16.mxu1 %v6199_v58  ;;  %v6280_v58 = vld [vmem:[#allocation7 + $0xec4] ss:$16 sps:$4 sm:$0xff]  }
 0x2c6   :  { %4113 = vmatpush1.bf16.msra.mxu0 %v6194_v59  ;;  %v6283_v59 = vld [vmem:[#allocation7 + $0xecc] ss:$16 sps:$4 sm:$0xff]  }
 0x2c7   :  { %4441 = vmatpush1.bf16.msra.mxu1 %v6197_v60  ;;  %4114 = vmatprep.subr.bf16.mxu0 %v6202_v61  ;;  %v6278_v60 = vld [vmem:[#allocation7 + $0xec0] ss:$16 sps:$4 sm:$0xff]   ;;  %v6281_v61 = vld [vmem:[#allocation7 + $0xec8] ss:$16 sps:$4 sm:$0xff]  }
 0x2c8   :  { %4442 = vmatprep.subr.bf16.mxu1 %v6205_v62  ;;  %v6286_v62 = vld [vmem:[#allocation7 + $0xee4] ss:$16 sps:$4 sm:$0xff]  }
 0x2ca   :  { %4115 = vmatpush1.bf16.msra.mxu0 %v6200_v63  ;;  %v6289_v63 = vld [vmem:[#allocation7 + $0xeec] ss:$16 sps:$4 sm:$0xff]  }
 0x2cb   :  { %4443 = vmatpush1.bf16.msra.mxu1 %v6203_v1  ;;  %4116 = vmatprep.subr.bf16.mxu0 %v6208_v2  ;;  %v6284_v1 = vld [vmem:[#allocation7 + $0xee0] ss:$16 sps:$4 sm:$0xff]   ;;  %v6287_v2 = vld [vmem:[#allocation7 + $0xee8] ss:$16 sps:$4 sm:$0xff]  }
 0x2cc   :  { %4444 = vmatprep.subr.bf16.mxu1 %v6211_v6  ;;  %v6292_v6 = vld [vmem:[#allocation7 + $0xf04] ss:$16 sps:$4 sm:$0xff]  }
 0x2ce   :  { %4117 = vmatpush1.bf16.msra.mxu0 %v6206_v11  ;;  %v6295_v11 = vld [vmem:[#allocation7 + $0xf0c] ss:$16 sps:$4 sm:$0xff]  }
 0x2cf   :  { %4445 = vmatpush1.bf16.msra.mxu1 %v6209_v12  ;;  %4118 = vmatprep.subr.bf16.mxu0 %v6214_v13  ;;  %v6290_v12 = vld [vmem:[#allocation7 + $0xf00] ss:$16 sps:$4 sm:$0xff]   ;;  %v6293_v13 = vld [vmem:[#allocation7 + $0xf08] ss:$16 sps:$4 sm:$0xff]  }
 0x2d0   :  { %4446 = vmatprep.subr.bf16.mxu1 %v6217_v52  ;;  %v6298_v52 = vld [vmem:[#allocation7 + $0xf24] ss:$16 sps:$4 sm:$0xff]  }
 0x2d2   :  { %4119 = vmatpush1.bf16.msra.mxu0 %v6212_v3  ;;  %v6301_v3 = vld [vmem:[#allocation7 + $0xf2c] ss:$16 sps:$4 sm:$0xff]  }
 0x2d3   :  { %4447 = vmatpush1.bf16.msra.mxu1 %v6215_v14  ;;  %4120 = vmatprep.subr.bf16.mxu0 %v6220_v15  ;;  %v6296_v14 = vld [vmem:[#allocation7 + $0xf20] ss:$16 sps:$4 sm:$0xff]   ;;  %v6299_v15 = vld [vmem:[#allocation7 + $0xf28] ss:$16 sps:$4 sm:$0xff]  }
 0x2d4   :  { %4448 = vmatprep.subr.bf16.mxu1 %v6223_v16  ;;  %v6304_v16 = vld [vmem:[#allocation7 + $0xf44] ss:$16 sps:$4 sm:$0xff]  }
 0x2d6   :  { %4121 = vmatpush1.bf16.msra.mxu0 %v6218_v21  ;;  %v6307_v21 = vld [vmem:[#allocation7 + $0xf4c] ss:$16 sps:$4 sm:$0xff]  }
 0x2d7   :  { %4449 = vmatpush1.bf16.msra.mxu1 %v6221_v23  ;;  %4122 = vmatprep.subr.bf16.mxu0 %v6226_v9  ;;  %v6302_v23 = vld [vmem:[#allocation7 + $0xf40] ss:$16 sps:$4 sm:$0xff]   ;;  %v6305_v9 = vld [vmem:[#allocation7 + $0xf48] ss:$16 sps:$4 sm:$0xff]  }
 0x2d8   :  { %4450 = vmatprep.subr.bf16.mxu1 %v6229_v5  ;;  %v6310_v5 = vld [vmem:[#allocation7 + $0xf64] ss:$16 sps:$4 sm:$0xff]  }
 0x2da   :  { %4123 = vmatpush1.bf16.msra.mxu0 %v6224_v20  ;;  %v6313_v20 = vld [vmem:[#allocation7 + $0xf6c] ss:$16 sps:$4 sm:$0xff]  }
 0x2db   :  { %4451 = vmatpush1.bf16.msra.mxu1 %v6227_v36  ;;  %4124 = vmatprep.subr.bf16.mxu0 %v6232_v24  ;;  %v6308_v36 = vld [vmem:[#allocation7 + $0xf60] ss:$16 sps:$4 sm:$0xff]   ;;  %v6311_v24 = vld [vmem:[#allocation7 + $0xf68] ss:$16 sps:$4 sm:$0xff]  }
 0x2dc   :  { %4452 = vmatprep.subr.bf16.mxu1 %v6235_v25  ;;  %v6316_v25 = vld [vmem:[#allocation7 + $0xf84] ss:$16 sps:$4 sm:$0xff]  }
 0x2de   :  { %4125 = vmatpush1.bf16.msra.mxu0 %v6230_v26  ;;  %v6319_v26 = vld [vmem:[#allocation7 + $0xf8c] ss:$16 sps:$4 sm:$0xff]  }
 0x2df   :  { %4453 = vmatpush1.bf16.msra.mxu1 %v6233_v27  ;;  %4126 = vmatprep.subr.bf16.mxu0 %v6238_v28  ;;  %v6314_v27 = vld [vmem:[#allocation7 + $0xf80] ss:$16 sps:$4 sm:$0xff]   ;;  %v6317_v28 = vld [vmem:[#allocation7 + $0xf88] ss:$16 sps:$4 sm:$0xff]  }
 0x2e0   :  { %4454 = vmatprep.subr.bf16.mxu1 %v6241_v44  ;;  %v6322_v44 = vld [vmem:[#allocation7 + $0xfa4] ss:$16 sps:$4 sm:$0xff]  }
 0x2e2   :  { %4127 = vmatpush1.bf16.msra.mxu0 %v6236_v29  ;;  %v6325_v29 = vld [vmem:[#allocation7 + $0xfac] ss:$16 sps:$4 sm:$0xff]  }
 0x2e3   :  { %4455 = vmatpush1.bf16.msra.mxu1 %v6239_v30  ;;  %4137 = vmatprep.subr.bf16.mxu0 %v6244_v31  ;;  %v6323_v30 = vld [vmem:[#allocation7 + $0xfa8] ss:$16 sps:$4 sm:$0xff]   ;;  %v6328_v31 = vld [vmem:[#allocation7 + $0xfc4] ss:$16 sps:$4 sm:$0xff]  }
 0x2e4   :  { %4465 = vmatprep.subr.bf16.mxu1 %v6247_v33  ;;  %v6331_v33 = vld [vmem:[#allocation7 + $0xfcc] ss:$16 sps:$4 sm:$0xff]  }
 0x2e5   :  { %4129 = vmatmul.mubr.bf16.vlgmr.msra.gmra.mrb[16].mxu0 %v752_v39 }
 0x2e6   :  { %4457 = vmatmul.mubr.bf16.vlgmr.msra.gmra.mrb[16].mxu1 %v752_v39  ;;  %4138 = vmatpush1.bf16.msra.mxu0 %v6242_v35  ;;  %v6329_v35 = vld [vmem:[#allocation7 + $0xfc8] ss:$16 sps:$4 sm:$0xff]   ;;  %v6334_v39 = vld [vmem:[#allocation7 + $0xfe4] ss:$16 sps:$4 sm:$0xff]  }
 0x2e7   :  { %4169 = vmatprep.mubr.bf16.mxu0 %v755_v43  ;;  %4466 = vmatpush1.bf16.msra.mxu1 %v6245_v40  ;;  %v6337_v40 = vld [vmem:[#allocation7 + $0xfec] ss:$16 sps:$4 sm:$0xff]  }
 0x2e8   :  { %4497 = vmatprep.mubr.bf16.mxu1 %v755_v43  ;;  %4139 = vmatprep.subr.bf16.mxu0 %v6250_v42  ;;  %v6332_v42 = vld [vmem:[#allocation7 + $0xfe0] ss:$16 sps:$4 sm:$0xff]   ;;  %v738_v43 = vmax.f32 %v6766_v34, 0.0 }
 0x2e9   :  { %4467 = vmatprep.subr.bf16.mxu1 %v6253_v19  ;;  %v6335_v19 = vld [vmem:[#allocation7 + $0xfe8] ss:$16 sps:$4 sm:$0xff]   ;;  %v6345_v34 = vld [vmem:[#allocation10 + $0x88] sm:$0xff]  }
 0x2ea   :  { %4140 = vmatpush1.bf16.msra.mxu0 %v6248_v22  ;;  %v6338_v22 = vld [vmem:[#allocation10 + $0x40] sm:$0xff]  }
 0x2eb   :  { %4468 = vmatpush1.bf16.msra.mxu1 %v6251_v45  ;;  %4141 = vmatprep.subr.bf16.mxu0 %v6256_v46  ;;  %v6339_v45 = vld [vmem:[#allocation10 + $0xc0] sm:$0xff]  }
 0x2ec   :  { %4469 = vmatprep.subr.bf16.mxu1 %v6259_v38  ;;  %v6340_v46 = vld [vmem:[#allocation10] sm:$0xff]   ;;  %v754_v38 = vpack.c.bf16 %v738_v43, %v738_v43 }
 0x2ee   :  { %4142 = vmatpush1.bf16.msra.mxu0 %v6254_v7  ;;  %v6341_v7 = vld [vmem:[#allocation10 + $0x80] sm:$0xff]  }
 0x2ef   :  { %4470 = vmatpush1.bf16.msra.mxu1 %v6257_v18  ;;  %4143 = vmatprep.subr.bf16.mxu0 %v6262_v17  ;;  %v6342_v18 = vld [vmem:[#allocation10 + $0x48] sm:$0xff]  }
 0x2f0   :  { %4471 = vmatprep.subr.bf16.mxu1 %v6265_v47  ;;  %v6343_v17 = vld [vmem:[#allocation10 + $0xc8] sm:$0xff]  }
 0x2f1   :  { %v6344_v47 = vld [vmem:[#allocation10 + $0x8] sm:$0xff]  }
 0x2f2   :  { %4144 = vmatpush1.bf16.msra.mxu0 %v6260_v55  ;;  %v6346_v55 = vld [vmem:[#allocation10 + $0x50] sm:$0xff]  }
 0x2f3   :  { %4472 = vmatpush1.bf16.msra.mxu1 %v6263_v48  ;;  %4145 = vmatprep.subr.bf16.mxu0 %v6268_v49  ;;  %v6347_v48 = vld [vmem:[#allocation10 + $0xd0] sm:$0xff]  }
 0x2f4   :  { %4473 = vmatprep.subr.bf16.mxu1 %v6271_v50  ;;  %v6348_v49 = vld [vmem:[#allocation10 + $0x10] sm:$0xff]  }
 0x2f5   :  { %v6349_v50 = vld [vmem:[#allocation10 + $0x90] sm:$0xff]  }
 0x2f6   :  { %4146 = vmatpush1.bf16.msra.mxu0 %v6266_v41  ;;  %v6350_v41 = vld [vmem:[#allocation10 + $0x58] sm:$0xff]  }
 0x2f7   :  { %4474 = vmatpush1.bf16.msra.mxu1 %v6269_v51  ;;  %4147 = vmatprep.subr.bf16.mxu0 %v6274_v54  ;;  %v6351_v51 = vld [vmem:[#allocation10 + $0xd8] sm:$0xff]  }
 0x2f8   :  { %4475 = vmatprep.subr.bf16.mxu1 %v6277_v37  ;;  %v6352_v54 = vld [vmem:[#allocation10 + $0x18] sm:$0xff]  }
 0x2f9   :  { %v6353_v37 = vld [vmem:[#allocation10 + $0x98] sm:$0xff]  }
 0x2fa   :  { %4148 = vmatpush1.bf16.msra.mxu0 %v6272_v56  ;;  %v6354_v56 = vld [vmem:[#allocation10 + $0x60] sm:$0xff]  }
 0x2fb   :  { %4476 = vmatpush1.bf16.msra.mxu1 %v6275_v57  ;;  %4149 = vmatprep.subr.bf16.mxu0 %v6280_v58  ;;  %v6355_v57 = vld [vmem:[#allocation10 + $0xe0] sm:$0xff]  }
 0x2fc   :  { %4477 = vmatprep.subr.bf16.mxu1 %v6283_v59  ;;  %v6356_v58 = vld [vmem:[#allocation10 + $0x20] sm:$0xff]  }
 0x2fd   :  { %v6357_v59 = vld [vmem:[#allocation10 + $0xa0] sm:$0xff]  }
 0x2fe   :  { %4150 = vmatpush1.bf16.msra.mxu0 %v6278_v60  ;;  %v6358_v60 = vld [vmem:[#allocation10 + $0x68] sm:$0xff]  }
 0x2ff   :  { %4478 = vmatpush1.bf16.msra.mxu1 %v6281_v61  ;;  %4151 = vmatprep.subr.bf16.mxu0 %v6286_v62  ;;  %v6359_v61 = vld [vmem:[#allocation10 + $0xe8] sm:$0xff]  }
 0x300   :  { %4479 = vmatprep.subr.bf16.mxu1 %v6289_v63  ;;  %v6360_v62 = vld [vmem:[#allocation10 + $0x28] sm:$0xff]  }
 0x301   :  { %v6361_v63 = vld [vmem:[#allocation10 + $0xa8] sm:$0xff]  }
 0x302   :  { %4152 = vmatpush1.bf16.msra.mxu0 %v6284_v1  ;;  %v6362_v1 = vld [vmem:[#allocation10 + $0x70] sm:$0xff]  }
 0x303   :  { %4480 = vmatpush1.bf16.msra.mxu1 %v6287_v2  ;;  %4153 = vmatprep.subr.bf16.mxu0 %v6292_v6  ;;  %v6363_v2 = vld [vmem:[#allocation10 + $0xf0] sm:$0xff]  }
 0x304   :  { %4481 = vmatprep.subr.bf16.mxu1 %v6295_v11  ;;  %v6364_v6 = vld [vmem:[#allocation10 + $0x30] sm:$0xff]  }
 0x305   :  { %v6365_v11 = vld [vmem:[#allocation10 + $0xb0] sm:$0xff]  }
 0x306   :  { %4154 = vmatpush1.bf16.msra.mxu0 %v6290_v12  ;;  %v6366_v12 = vld [vmem:[#allocation10 + $0x78] sm:$0xff]  }
 0x307   :  { %4482 = vmatpush1.bf16.msra.mxu1 %v6293_v13  ;;  %4155 = vmatprep.subr.bf16.mxu0 %v6298_v52  ;;  %v6367_v13 = vld [vmem:[#allocation10 + $0xf8] sm:$0xff]  }
 0x308   :  { %4483 = vmatprep.subr.bf16.mxu1 %v6301_v3  ;;  %v6368_v52 = vld [vmem:[#allocation10 + $0x38] sm:$0xff]  }
 0x309   :  { %v6369_v3 = vld [vmem:[#allocation10 + $0xb8] sm:$0xff]  }
 0x30a   :  { %4156 = vmatpush1.bf16.msra.mxu0 %v6296_v14  ;;  %v1268_v14 = vld [vmem:[#allocation9] sm:$0xf] }
 0x30b   :  { %4484 = vmatpush1.bf16.msra.mxu1 %v6299_v15  ;;  %4157 = vmatprep.subr.bf16.mxu0 %v6304_v16  ;;  %v1273_v15 = vrot.slane %v1268_v14, %v6703_v8  ;;  %v1281_v16 = vrot.slane %v1268_v14, %v6732_v53 }
 0x30c   :  { %4485 = vmatprep.subr.bf16.mxu1 %v6307_v21  ;;  %v1277_v21 = vrot.slane %v1268_v14, %v6708_v10 }
 0x30e   :  { %4158 = vmatpush1.bf16.msra.mxu0 %v6302_v23  ;;  %v1285_v23 = vrot.slane %v1268_v14, %v6711_v0 }
 0x30f   :  { %4486 = vmatpush1.bf16.msra.mxu1 %v6305_v9  ;;  %4159 = vmatprep.subr.bf16.mxu0 %v6310_v5 }
 0x310   :  { %4487 = vmatprep.subr.bf16.mxu1 %v6313_v20 }
 0x312   :  { %4160 = vmatpush1.bf16.msra.mxu0 %v6308_v36 }
 0x313   :  { %4488 = vmatpush1.bf16.msra.mxu1 %v6311_v24  ;;  %4161 = vmatprep.subr.bf16.mxu0 %v6316_v25 }
 0x314   :  { %4489 = vmatprep.subr.bf16.mxu1 %v6319_v26 }
 0x316   :  { %4162 = vmatpush1.bf16.msra.mxu0 %v6314_v27 }
 0x317   :  { %4490 = vmatpush1.bf16.msra.mxu1 %v6317_v28  ;;  %4163 = vmatprep.subr.bf16.mxu0 %v6322_v44 }
 0x318   :  { %4491 = vmatprep.subr.bf16.mxu1 %v6325_v29 }
 0x31a   :  { %4164 = vmatpush1.bf16.msra.mxu0 %v6320_v4 }
 0x31b   :  { %4492 = vmatpush1.bf16.msra.mxu1 %v6323_v30  ;;  %4165 = vmatprep.subr.bf16.mxu0 %v6328_v31 }
 0x31c   :  { %4493 = vmatprep.subr.bf16.mxu1 %v6331_v33 }
 0x31e   :  { %4166 = vmatpush1.bf16.msra.mxu0 %v6326_v32 }
 0x31f   :  { %4494 = vmatpush1.bf16.msra.mxu1 %v6329_v35  ;;  %4167 = vmatprep.subr.bf16.mxu0 %v6334_v39 }
 0x320   :  { %4495 = vmatprep.subr.bf16.mxu1 %v6337_v40  ;;  %v5420_v40 = vld [vmem:[#allocation12] ss:$0 sm:$0xff] }
 0x322   :  { %4168 = vmatpush1.bf16.msra.mxu0 %v6332_v42 }
 0x323   :  { %4496 = vmatpush1.bf16.msra.mxu1 %v6335_v19  ;;  %5453 = vmatprep.subr.bf16.mxu0 %v6338_v22 }
 0x324   :  { %5475 = vmatprep.subr.bf16.mxu1 %v6339_v45 }
 0x325   :  { %4170 = vmatmul.mubr.bf16.vlgmr.msra.gmra.mrb[16].mxu0 %v754_v38 }
 0x326   :  { %4498 = vmatmul.mubr.bf16.vlgmr.msra.gmra.mrb[16].mxu1 %v754_v38  ;;  %5454 = vmatpush3.bf16.msra.mxu0 %v6340_v46 }
 0x327   :  { %5476 = vmatpush3.bf16.msra.mxu1 %v6341_v7  ;;  %5455 = vmatprep.subr.bf16.mxu0 %v6342_v18 }
 0x328   :  { %5477 = vmatprep.subr.bf16.mxu1 %v6343_v17 }
 0x32a   :  { %5456 = vmatpush3.bf16.msra.mxu0 %v6344_v47 }
 0x32b   :  { %5478 = vmatpush3.bf16.msra.mxu1 %v6345_v34  ;;  %5457 = vmatprep.subr.bf16.mxu0 %v6346_v55 }
 0x32c   :  { %5479 = vmatprep.subr.bf16.mxu1 %v6347_v48 }
 0x32e   :  { %5458 = vmatpush3.bf16.msra.mxu0 %v6348_v49 }
 0x32f   :  { %5480 = vmatpush3.bf16.msra.mxu1 %v6349_v50  ;;  %5459 = vmatprep.subr.bf16.mxu0 %v6350_v41 }
 0x330   :  { %5481 = vmatprep.subr.bf16.mxu1 %v6351_v51 }
 0x332   :  { %5460 = vmatpush3.bf16.msra.mxu0 %v6352_v54 }
 0x333   :  { %5482 = vmatpush3.bf16.msra.mxu1 %v6353_v37  ;;  %5461 = vmatprep.subr.bf16.mxu0 %v6354_v56 }
 0x334   :  { %5483 = vmatprep.subr.bf16.mxu1 %v6355_v57 }
 0x336   :  { %5462 = vmatpush3.bf16.msra.mxu0 %v6356_v58 }
 0x337   :  { %5484 = vmatpush3.bf16.msra.mxu1 %v6357_v59  ;;  %5463 = vmatprep.subr.bf16.mxu0 %v6358_v60 }
 0x338   :  { %5485 = vmatprep.subr.bf16.mxu1 %v6359_v61 }
 0x33a   :  { %5464 = vmatpush3.bf16.msra.mxu0 %v6360_v62 }
 0x33b   :  { %5486 = vmatpush3.bf16.msra.mxu1 %v6361_v63  ;;  %5465 = vmatprep.subr.bf16.mxu0 %v6362_v1 }
 0x33c   :  { %5487 = vmatprep.subr.bf16.mxu1 %v6363_v2 }
 0x33e   :  { %5466 = vmatpush3.bf16.msra.mxu0 %v6364_v6 }
 0x33f   :  { %5488 = vmatpush3.bf16.msra.mxu1 %v6365_v11  ;;  %5467 = vmatprep.subr.bf16.mxu0 %v6366_v12 }
 0x340   :  { %5489 = vmatprep.subr.bf16.mxu1 %v6367_v13 }
 0x342   :  { %5468 = vmatpush3.bf16.msra.mxu0 %v6368_v52 }
 0x343   :  { %5490 = vmatpush3.bf16.msra.mxu1 %v6369_v3 }
 0x3f8   :  { %v4171_v9 = vpop.f32.mrb[16].mxu0 }
 0x3f9   :  { %v5497_v5 = vadd.f32 %v4171_v9, %v1273_v15  ;;  %v4499_v20 = vpop.f32.mrb[16].mxu1  ;;  %v4173_v36 = vpop.f32.mrb[17].mxu0 }
 0x3fa   :  { %v5499_v24 = vadd.f32 %v4499_v20, %v1281_v16  ;;  %v5498_v25 = vadd.f32 %v4173_v36, %v1277_v21  ;;  %v4501_v26 = vpop.f32.mrb[17].mxu1  ;;  %v4175_v27 = vpop.f32.mrb[18].mxu0 }
 0x3fb   :  { %v4506_v28 = vmax.f32 %v5497_v5, 0.0  ;;  %v5500_v44 = vadd.f32 %v4501_v26, %v1285_v23  ;;  %v4503_v29 = vpop.f32.mrb[18].mxu1  ;;  %v4176_v4 = vpop.f32.mrb[19].mxu0 }
 0x3fc   :  { %v4508_v30 = vmax.f32 %v5499_v24, 0.0  ;;  %v4507_v8 = vmax.f32 %v5498_v25, 0.0  ;;  %v4504_v31 = vpop.f32.mrb[19].mxu1 }
 0x3fd   :  { %v4509_v53 = vmax.f32 %v5500_v44, 0.0  ;;  %v4510_v10 = vpack.c.bf16 %v4506_v28, %v4506_v28 }
 0x3fe   :  { %v4511_v33 = vpack.c.bf16 %v4507_v8, %v4507_v8  ;;  %v4512_v0 = vpack.c.bf16 %v4508_v30, %v4508_v30 }
 0x3ff   :  { %v4513_v32 = vpack.c.bf16 %v4509_v53, %v4509_v53 }
 0x400   :  { %4809 = vmatprep.mubr.bf16.mxu0 %v4511_v33 }
 0x401   :  { %4849 = vmatprep.mubr.bf16.mxu1 %v4513_v32  ;;  %4810 = vmatmul.mubr.bf16.vlgmr.msra.gmra.mrb[20].mxu0 %v4510_v10 }
 0x402   :  { %4850 = vmatmul.mubr.bf16.vlgmr.msra.gmra.mrb[20].mxu1 %v4512_v0 }
 0x4d4   :  { %v5469_v35 = vpop.f32.mrb[20].mxu0 }
 0x4d5   :  { %v5491_v39 = vpop.f32.mrb[20].mxu1  ;;  %v5470_v42 = vpop.f32.mrb[21].mxu0 }
 0x4d6   :  { %v5471_v43 = vadd.f32 %v5470_v42, %v5469_v35  ;;  %v5492_v19 = vpop.f32.mrb[21].mxu1  ;;  %v5472_v22 = vpop.f32.mrb[22].mxu0 }
 0x4d7   :  { %v5493_v45 = vadd.f32 %v5492_v19, %v5491_v39  ;;  %v5494_v46 = vpop.f32.mrb[22].mxu1  ;;  %v5473_v38 = vpop.f32.mrb[23].mxu0 }
 0x4d8   :  { %v4812_v7 = vadd.f32 %v5471_v43, %v5420_v40  ;;  %v5495_v18 = vpop.f32.mrb[23].mxu1 }
 0x4da   :  { %v4852_v17 = vadd.f32 %v5493_v45, %v4812_v7 }
 0x4dc   :  { %v4857_v47 = vmax.f32 %v4852_v17, 0.0 }
 0x4de   :  { %v4858_v34 = vpack.c.bf16 %v4857_v47, %v4857_v47 }
 0x4e0   :  { %4859 = vst [vmem:[%s6813_s7] sm:$0x1] %v4858_v34 }
 0x4e1   :  { %4864 = vsyncpa [#allocation3], 1 }
 0x4e2   :  { %4865 = vsyncpa [#allocation5], 1 }
 0x4e3   :  { %4866 = vsyncpa [#allocation8], 1 }
 0x4e4   :  { %4867 = vsyncpa [#allocation11], 1 }

</bundles_post_ra>
